<compile_context>
chip_gen: v7x
topology: tpu7x:2x2x1
jax: 0.10.0
libtpu: 0.0.40
codegen_flags: <defaults>
</compile_context>

<pallas_src>
import jax
import jax.numpy as jnp
from jax.experimental import pallas as pl
from jax.experimental.pallas import tpu as pltpu

EPS = 1e-5


def _round_up(x, m):
    return (x + m - 1) // m * m


# ---------------------------------------------------------------------------
# Pallas kernels
# ---------------------------------------------------------------------------
def _mm_kernel(a_ref, b_ref, aux_ref, res_ref, o_ref):
    """Full-K matmul tile with fused BN-affine / per-column ReLU / residual."""
    acc = jnp.dot(a_ref[...], b_ref[...], preferred_element_type=jnp.float32)
    aux = aux_ref[...]                       # (4, tn): scale, shift, relu1, relu2
    scale, shift = aux[0:1, :], aux[1:2, :]
    m1, m2 = aux[2:3, :], aux[3:4, :]
    y = acc * scale + shift
    y = jnp.where(m1 > 0, jnp.maximum(y, 0.0), y)
    y = y + res_ref[...]
    y = jnp.where(m2 > 0, jnp.maximum(y, 0.0), y)
    o_ref[...] = y


def _make_pool_nm_kernel(H, W):
    """Normal-cell pool: outputs (avg3x3, relu(avg3x3 + max3x3)), stride 1."""
    def kernel(x0_ref, xn_ref, avg_ref, br1_ref):
        x0 = x0_ref[...]
        xn = xn_ref[...]
        s = x0[:, 0:H, 0:W, :]
        m = xn[:, 0:H, 0:W, :]
        for dh in range(3):
            for dw in range(3):
                if dh == 0 and dw == 0:
                    continue
                s = s + x0[:, dh:dh + H, dw:dw + W, :]
                m = jnp.maximum(m, xn[:, dh:dh + H, dw:dw + W, :])
        avg = s * (1.0 / 9.0)
        avg_ref[...] = avg
        br1_ref[...] = jnp.maximum(avg + m, 0.0)
    return kernel


def _make_pool_rd_kernel(H, W):
    """Reduction-cell pool: outputs (avg, max, relu(max+max)), stride 1."""
    def kernel(x0_ref, xn_ref, avg_ref, mx_ref, br2_ref):
        x0 = x0_ref[...]
        xn = xn_ref[...]
        s = x0[:, 0:H, 0:W, :]
        m = xn[:, 0:H, 0:W, :]
        for dh in range(3):
            for dw in range(3):
                if dh == 0 and dw == 0:
                    continue
                s = s + x0[:, dh:dh + H, dw:dw + W, :]
                m = jnp.maximum(m, xn[:, dh:dh + H, dw:dw + W, :])
        avg_ref[...] = s * (1.0 / 9.0)
        mx_ref[...] = m
        br2_ref[...] = jnp.maximum(m + m, 0.0)
    return kernel


def _make_pool_avg_add_kernel(H, W):
    """avg-pool 3x3 + add + relu (branch5 of the normal cell)."""
    def kernel(x0_ref, add_ref, o_ref):
        x0 = x0_ref[...]
        s = x0[:, 0:H, 0:W, :]
        for dh in range(3):
            for dw in range(3):
                if dh == 0 and dw == 0:
                    continue
                s = s + x0[:, dh:dh + H, dw:dw + W, :]
        o_ref[...] = jnp.maximum(s * (1.0 / 9.0) + add_ref[...], 0.0)
    return kernel


def _gap_kernel(x_ref, o_ref):
    o_ref[...] = jnp.mean(x_ref[...], axis=1)


# ---------------------------------------------------------------------------
# Pallas call wrappers
# ---------------------------------------------------------------------------
def _full_spec(shape):
    n = len(shape)
    return pl.BlockSpec(shape, lambda *_: (0,) * n)


def pick_tile_n(K, N):
    """N tile width: lane-dense, double-buffered bf16 weight block ~<8MB."""
    cap = 4 * 1024 * 1024
    tn = 128
    for cand in (512, 384, 256, 128):
        if K * cand * 2 <= cap:
            tn = cand
            break
    tn = min(tn, _round_up(N, 128))
    Np = _round_up(N, tn)
    return tn, Np


def matmul_fused(a2d, unit, res2d=None):
    """out[:M,:N] = epilogue((a2d @ W) * scale + shift, residual)."""
    M, K = a2d.shape
    assert K == unit['K'], (K, unit['K'])
    Np, tn = unit['Np'], unit['tn']
    Mp = _round_up(max(M, 8), 8)
    a_p = jnp.pad(a2d, ((0, Mp - M), (0, 0))).astype(jnp.bfloat16)
    if res2d is None:
        r_p = jnp.zeros((Mp, Np), jnp.float32)
    else:
        r_p = jnp.pad(res2d.astype(jnp.float32),
                      ((0, Mp - M), (0, Np - res2d.shape[1])))
    out = pl.pallas_call(
        _mm_kernel,
        out_shape=jax.ShapeDtypeStruct((Mp, Np), jnp.float32),
        grid=(Np // tn,),
        in_specs=[
            pl.BlockSpec((Mp, K), lambda j: (0, 0)),     # activations (bf16)
            pl.BlockSpec((K, tn), lambda j: (0, j)),     # weights (bf16)
            pl.BlockSpec((4, tn), lambda j: (0, j)),     # scale/shift/relu masks
            pl.BlockSpec((Mp, tn), lambda j: (0, j)),    # residual
        ],
        out_specs=pl.BlockSpec((Mp, tn), lambda j: (0, j)),
        compiler_params=pltpu.CompilerParams(
            dimension_semantics=("parallel",),
            vmem_limit_bytes=32 * 1024 * 1024),
    )(a_p, unit['w'], unit['aux'], r_p)
    return out[:M, :unit['N']]


def im2col(x, kh, kw, stride, pad_h, pad_w):
    N, H, W, C = x.shape
    xp = jnp.pad(x, ((0, 0), (pad_h, pad_h), (pad_w, pad_w), (0, 0)))
    Ho = (H + 2 * pad_h - kh) // stride + 1
    Wo = (W + 2 * pad_w - kw) // stride + 1
    cols = []
    for i in range(kh):
        for j in range(kw):
            cols.append(xp[:, i:i + stride * (Ho - 1) + 1:stride,
                           j:j + stride * (Wo - 1) + 1:stride, :])
    patches = jnp.stack(cols, axis=3)               # (N, Ho, Wo, kh*kw, C)
    return patches.reshape(N * Ho * Wo, kh * kw * C), (N, Ho, Wo)


def conv_apply(unit, x, res=None):
    cols, (Nb, Ho, Wo) = im2col(x, unit['kh'], unit['kw'], unit['stride'],
                                unit['pad_h'], unit['pad_w'])
    r2d = None if res is None else res.reshape(Nb * Ho * Wo, -1)
    y = matmul_fused(cols, unit, r2d)
    return y.reshape(Nb, Ho, Wo, unit['N'])


def pool_normal(x):
    Nb, H, W, C = x.shape
    x0 = jnp.pad(x, ((0, 0), (1, 1), (1, 1), (0, 0)))
    xn = jnp.pad(x, ((0, 0), (1, 1), (1, 1), (0, 0)), constant_values=-jnp.inf)
    o = jax.ShapeDtypeStruct((Nb, H, W, C), jnp.float32)
    avg, br1 = pl.pallas_call(
        _make_pool_nm_kernel(H, W),
        out_shape=(o, o),
        grid=(1,),
        in_specs=[_full_spec(x0.shape), _full_spec(xn.shape)],
        out_specs=(_full_spec((Nb, H, W, C)), _full_spec((Nb, H, W, C))),
    )(x0, xn)
    return avg, br1


def pool_reduction(x):
    Nb, H, W, C = x.shape
    x0 = jnp.pad(x, ((0, 0), (1, 1), (1, 1), (0, 0)))
    xn = jnp.pad(x, ((0, 0), (1, 1), (1, 1), (0, 0)), constant_values=-jnp.inf)
    o = jax.ShapeDtypeStruct((Nb, H, W, C), jnp.float32)
    avg, mx, br2 = pl.pallas_call(
        _make_pool_rd_kernel(H, W),
        out_shape=(o, o, o),
        grid=(1,),
        in_specs=[_full_spec(x0.shape), _full_spec(xn.shape)],
        out_specs=(_full_spec((Nb, H, W, C)),) * 3,
    )(x0, xn)
    # stride-2, pad-1, k=3 pooling == stride-1 pooling subsampled at even offsets
    return avg[:, ::2, ::2, :], mx[:, ::2, ::2, :], br2[:, ::2, ::2, :]


def pool_avg_add_relu(x, add):
    Nb, H, W, C = x.shape
    x0 = jnp.pad(x, ((0, 0), (1, 1), (1, 1), (0, 0)))
    return pl.pallas_call(
        _make_pool_avg_add_kernel(H, W),
        out_shape=jax.ShapeDtypeStruct((Nb, H, W, C), jnp.float32),
        grid=(1,),
        in_specs=[_full_spec(x0.shape), _full_spec(add.shape)],
        out_specs=_full_spec((Nb, H, W, C)),
    )(x0, add)


def global_avg_pool(x):
    Nb, H, W, C = x.shape
    xr = x.reshape(Nb, H * W, C)
    return pl.pallas_call(
        _gap_kernel,
        out_shape=jax.ShapeDtypeStruct((Nb, C), jnp.float32),
        grid=(1,),
        in_specs=[_full_spec((Nb, H * W, C))],
        out_specs=_full_spec((Nb, C)),
    )(xr)


# ---------------------------------------------------------------------------
# Parameter construction (deterministic, fused / padded / bf16 at build time)
# ---------------------------------------------------------------------------
class _Rng:
    def __init__(self, seed):
        self._key = jax.random.PRNGKey(seed)

    def next(self):
        self._key, sub = jax.random.split(self._key)
        return sub


def _he_weight(rng, K, n):
    return jax.random.normal(rng.next(), (K, n), jnp.float32) * (2.0 / K) ** 0.5


def _conv_bias(rng, n):
    return 0.01 * jax.random.normal(rng.next(), (n,), jnp.float32)


def _bn_fold(rng, n, bias=None):
    gamma = 1.0 + 0.05 * jax.random.normal(rng.next(), (n,), jnp.float32)
    beta = 0.05 * jax.random.normal(rng.next(), (n,), jnp.float32)
    scale = gamma / jnp.sqrt(1.0 + EPS)          # running stats (0, 1), eval mode
    shift = beta + (bias * scale if bias is not None else 0.0)
    return scale, shift


def _embed_taps(w, k_small, k_big, C):
    """Zero-embed a k_small-tap conv weight (tap-major rows, C per tap) in k_big."""
    off = (k_big - k_small) // 2
    out = jnp.zeros((k_big * C, w.shape[1]), w.dtype)
    return out.at[off * C:(off + k_small) * C, :].set(w)


def _make_unit(w, scale, shift, m1, m2, kh, kw, stride, pad_h, pad_w):
    K, N = w.shape
    tn, Np = pick_tile_n(K, N)
    wp = jnp.pad(w, ((0, 0), (0, Np - N))).astype(jnp.bfloat16)
    aux = jnp.pad(jnp.stack([scale, shift, m1, m2]).astype(jnp.float32),
                  ((0, 0), (0, Np - N)))
    return dict(w=wp, aux=aux, K=K, N=N, Np=Np, tn=tn, kh=kh, kw=kw,
                stride=stride, pad_h=pad_h, pad_w=pad_w)


def build_normal(rng, Cin):
    mid, sepout4, sepout5 = 4, 4, 4
    # --- downsample1 (Cin->Cin) and downsample2 (Cin->4) fused 1x1 conv, no bias
    w_ds1 = _he_weight(rng, Cin, Cin)
    s_ds1, t_ds1 = _bn_fold(rng, Cin)
    w_ds2 = _he_weight(rng, Cin, sepout5)
    s_ds2, t_ds2 = _bn_fold(rng, sepout5)
    ds = _make_unit(jnp.concatenate([w_ds1, w_ds2], axis=1),
                    jnp.concatenate([s_ds1, s_ds2]),
                    jnp.concatenate([t_ds1, t_ds2]),
                    m1=jnp.zeros(Cin + 4, jnp.float32),
                    m2=jnp.concatenate([jnp.ones(Cin), jnp.zeros(4)]),
                    kh=1, kw=1, stride=1, pad_h=0, pad_w=0)
    # --- sep3_4 / sep3_6 first convs (1x3) on x, fused
    w_a = _he_weight(rng, 3 * Cin, mid)
    s_a, t_a = _bn_fold(rng, mid, _conv_bias(rng, mid))
    w_b = _he_weight(rng, 3 * Cin, mid)
    s_b, t_b = _bn_fold(rng, mid, _conv_bias(rng, mid))
    first_x = _make_unit(jnp.concatenate([w_a, w_b], axis=1),
                         jnp.concatenate([s_a, s_b]), jnp.concatenate([t_a, t_b]),
                         m1=jnp.ones(8), m2=jnp.zeros(8),
                         kh=1, kw=3, stride=1, pad_h=0, pad_w=1)
    # --- sep5_4 (1x5) / sep3_5 (1x3 embedded into 1x5) first convs on branch1
    w_c = _he_weight(rng, 5 * Cin, mid)
    s_c, t_c = _bn_fold(rng, mid, _conv_bias(rng, mid))
    w_d = _embed_taps(_he_weight(rng, 3 * Cin, mid), 3, 5, Cin)
    s_d, t_d = _bn_fold(rng, mid, _conv_bias(rng, mid))
    first_b = _make_unit(jnp.concatenate([w_c, w_d], axis=1),
                         jnp.concatenate([s_c, s_d]), jnp.concatenate([t_c, t_d]),
                         m1=jnp.ones(8), m2=jnp.zeros(8),
                         kh=1, kw=5, stride=1, pad_h=0, pad_w=2)
    # --- all four second convs (kx1) fused, block-diagonal over mid groups:
    # mid_all channel groups: [sep3_4, sep3_6, sep5_4, sep3_5]
    # output columns:         [sep2,   sep4,   sep1,   branch4]
    specs = [(3, sepout4), (3, sepout4), (5, sepout4), (3, sepout5)]
    Cm, Ntot = 16, 16
    W2 = jnp.zeros((5, Cm, Ntot), jnp.float32)
    scales, shifts = [], []
    col = 0
    for g, (k, cout) in enumerate(specs):
        w2 = _he_weight(rng, k * mid, cout)
        s2, t2 = _bn_fold(rng, cout, _conv_bias(rng, cout))
        toff = (5 - k) // 2
        W2 = W2.at[toff:toff + k, 4 * g:4 * g + 4, col:col + cout].set(
            w2.reshape(k, mid, cout))
        scales.append(s2)
        shifts.append(t2)
        col += cout
    second = _make_unit(W2.reshape(5 * Cm, Ntot),
                        jnp.concatenate(scales), jnp.concatenate(shifts),
                        m1=jnp.ones(Ntot),
                        m2=jnp.concatenate([jnp.zeros(12), jnp.ones(4)]),
                        kh=5, kw=1, stride=1, pad_h=2, pad_w=0)
    return dict(ds=ds, first_x=first_x, first_b=first_b, second=second, Cin=Cin)


def build_reduction(rng, Cin):
    mid, sepout6 = 4, 4
    # mid channel group order: [sep3_2, sep7_4, sep7_5, sep3_6, sep7_6]
    first_ks = [3, 7, 7, 3, 7]
    ws, ss, ts = [], [], []
    for k in first_ks:
        w = _embed_taps(_he_weight(rng, k * Cin, mid), k, 7, Cin)
        s, t = _bn_fold(rng, mid, _conv_bias(rng, mid))
        ws.append(w)
        ss.append(s)
        ts.append(t)
    first = _make_unit(jnp.concatenate(ws, axis=1),
                       jnp.concatenate(ss), jnp.concatenate(ts),
                       m1=jnp.ones(20), m2=jnp.zeros(20),
                       kh=1, kw=7, stride=1, pad_h=0, pad_w=3)
    # second convs fused (kx1, stride 2): output cols [sep1, sep2, sep3, sep4, sep5]
    seconds = [(3, Cin), (7, Cin), (7, Cin), (3, sepout6), (7, sepout6)]
    Cm = 20
    Ntot = 3 * Cin + 2 * sepout6
    W2 = jnp.zeros((7, Cm, Ntot), jnp.float32)
    ss2, ts2 = [], []
    col = 0
    for g, (k, cout) in enumerate(seconds):
        w2 = _he_weight(rng, k * mid, cout)
        s2, t2 = _bn_fold(rng, cout, _conv_bias(rng, cout))
        toff = (7 - k) // 2
        W2 = W2.at[toff:toff + k, 4 * g:4 * g + 4, col:col + cout].set(
            w2.reshape(k, mid, cout))
        ss2.append(s2)
        ts2.append(t2)
        col += cout
    second = _make_unit(W2.reshape(7 * Cm, Ntot),
                        jnp.concatenate(ss2), jnp.concatenate(ts2),
                        m1=jnp.ones(Ntot), m2=jnp.ones(Ntot),
                        kh=7, kw=1, stride=2, pad_h=3, pad_w=0)
    return dict(first=first, second=second, Cin=Cin)


def build_amoebanet_params(seed=0):
    # cfg.dataset == 'cifar10' -> 10 classes; cfg.multihead == False.
    rng = _Rng(seed)
    params = {}
    num_classes = 10
    c = 24
    w = _he_weight(rng, 27, c)
    s, t = _bn_fold(rng, c, _conv_bias(rng, c))
    params['conv1'] = _make_unit(w, s, t, jnp.ones(c), jnp.zeros(c),
                                 kh=3, kw=3, stride=1, pad_h=1, pad_w=1)
    params['reduction1'] = build_reduction(rng, c); c = 4 * c + 4     # 100
    params['reduction2'] = build_reduction(rng, c); c = 4 * c + 4     # 404
    params['normal1'] = build_normal(rng, c); c += 8                  # 412
    params['normal2'] = build_normal(rng, c); c += 8                  # 420
    params['reduction3'] = build_reduction(rng, c); c = 4 * c + 4     # 1684
    params['normal3'] = build_normal(rng, c); c += 8                  # 1692
    params['normal4'] = build_normal(rng, c); c += 8                  # 1700
    params['reduction4'] = build_reduction(rng, c); c = 4 * c + 4     # 6804
    params['normal5'] = build_normal(rng, c); c += 8                  # 6812
    params['normal6'] = build_normal(rng, c); c += 8                  # 6820
    w_fc = jax.random.normal(rng.next(), (c, num_classes),
                             jnp.float32) * (1.0 / c) ** 0.5
    b_fc = _conv_bias(rng, num_classes)
    params['fc'] = _make_unit(w_fc, jnp.ones(num_classes), b_fc,
                              jnp.zeros(num_classes), jnp.zeros(num_classes),
                              kh=1, kw=1, stride=1, pad_h=0, pad_w=0)
    return params


# ---------------------------------------------------------------------------
# Cell forward passes
# ---------------------------------------------------------------------------
def normal_apply(p, x):
    Cin = p['Cin']
    avg_x, branch1 = pool_normal(x)                       # branch1 = relu(avg+max)
    ds_res = jnp.concatenate([avg_x, jnp.zeros_like(avg_x[..., :4])], axis=-1)
    ds_out = conv_apply(p['ds'], x, res=ds_res)           # [branch2 | identity2]
    branch2 = ds_out[..., :Cin]
    identity2 = ds_out[..., Cin:Cin + 4]
    mid_x = conv_apply(p['first_x'], x)                   # [sep3_4 mid | sep3_6 mid]
    mid_b = conv_apply(p['first_b'], branch1)             # [sep5_4 mid | sep3_5 mid]
    mid_all = jnp.concatenate([mid_x, mid_b], axis=-1)
    res2 = jnp.concatenate([jnp.zeros_like(mid_all[..., :12]), identity2], axis=-1)
    so = conv_apply(p['second'], mid_all, res=res2)       # [sep2|sep4|sep1|branch4]
    sep2 = so[..., 0:4]
    sep4 = so[..., 4:8]
    sep1 = so[..., 8:12]
    branch4 = so[..., 12:16]
    branch3 = jnp.maximum(sep1 + sep2, 0.0)
    branch5 = pool_avg_add_relu(branch3, sep4)            # relu(avgpool(branch3)+sep4)
    return jnp.concatenate([branch2, branch4, branch5], axis=-1)


def reduction_apply(p, x):
    Cin = p['Cin']
    avg, mx, branch2 = pool_reduction(x)                  # branch2 = relu(max+max)
    mid = conv_apply(p['first'], x)                       # 20 fused mid channels
    res = jnp.concatenate([avg, mx, avg, jnp.zeros_like(avg[..., :8])], axis=-1)
    out = conv_apply(p['second'], mid, res=res)
    branch1 = out[..., 0:Cin]
    branch3 = out[..., Cin:2 * Cin]
    branch4 = out[..., 2 * Cin:3 * Cin]
    sep4 = out[..., 3 * Cin:3 * Cin + 4]
    sep5 = out[..., 3 * Cin + 4:3 * Cin + 8]
    branch5 = jnp.maximum(sep4 + sep5, 0.0)
    return jnp.concatenate([branch1, branch2, branch3, branch4, branch5], axis=-1)


def amoebanet_forward(params, x_nchw):
    x = jnp.transpose(x_nchw.astype(jnp.float32), (0, 2, 3, 1))   # NCHW -> NHWC
    x = conv_apply(params['conv1'], x)
    x = reduction_apply(params['reduction1'], x)
    x = reduction_apply(params['reduction2'], x)
    x = normal_apply(params['normal1'], x)
    x = normal_apply(params['normal2'], x)
    x = reduction_apply(params['reduction3'], x)
    x = normal_apply(params['normal3'], x)
    x = normal_apply(params['normal4'], x)
    x = reduction_apply(params['reduction4'], x)
    x = normal_apply(params['normal5'], x)
    x = normal_apply(params['normal6'], x)
    feat = global_avg_pool(x)                 # AdaptiveAvgPool2d([1,1]) + flatten
    # TODO(synk): Dropout(p=cfg.drop_fc) is an inference-mode identity here.
    logits = matmul_fused(feat, params['fc'])
    return logits


if __name__ == "__main__":
    key = jax.random.PRNGKey(0)
    x = jax.random.normal(key, (2, 3, 16, 16), jnp.float32)   # NCHW, like PyTorch
    params = build_amoebanet_params(seed=0)
    logits = amoebanet_forward(params, x)
    logits = jax.block_until_ready(logits)
    assert logits.shape == (2, 10), logits.shape
    print("KERNEL_OK")
</pallas_src>

<mosaic_0001>
module attributes {stable_mosaic.version = 11 : i64} {
  func.func @_mm_kernel(%arg0: i32, %arg1: memref<512x27xbf16, #tpu.memory_space<vmem>>, %arg2: memref<27x128xbf16, #tpu.memory_space<vmem>>, %arg3: memref<4x128xf32, #tpu.memory_space<vmem>>, %arg4: memref<512x128xf32, #tpu.memory_space<vmem>>, %arg5: memref<512x128xf32, #tpu.memory_space<vmem>>) attributes {dimension_semantics = [#tpu.dimension_semantics<parallel>], iteration_bounds = array<i64: 1>, scalar_prefetch = 0 : i64, scratch_operands = 0 : i64, tpu.core_type = #tpu.core_type<tc>, window_params = [{pipeline_mode = #tpu.pipeline_mode<synchronous>, transform_indices = @transform_0, window_bounds = array<i64: 512, 27>}, {transform_indices = @transform_1, window_bounds = array<i64: 27, 128>}, {transform_indices = @transform_2, window_bounds = array<i64: 4, 128>}, {transform_indices = @transform_3, window_bounds = array<i64: 512, 128>}, {transform_indices = @transform_4, window_bounds = array<i64: 512, 128>}]} {
    %c0 = arith.constant 0 : index
    %c0_0 = arith.constant 0 : index
    %0 = vector.load %arg1[%c0, %c0_0] : memref<512x27xbf16, #tpu.memory_space<vmem>>, vector<512x27xbf16>
    %c0_1 = arith.constant 0 : index
    %c0_2 = arith.constant 0 : index
    %1 = vector.load %arg2[%c0_1, %c0_2] : memref<27x128xbf16, #tpu.memory_space<vmem>>, vector<27x128xbf16>
    %cst = arith.constant dense<0.000000e+00> : vector<512x128xf32>
    %2 = tpu.matmul %0, %1, %cst {dimension_numbers = #tpu.dot_dimension_numbers<[1], [0], [0], [1], [0, 0, 1, 1], [], []>} : vector<512x27xbf16>, vector<27x128xbf16>, vector<512x128xf32> -> vector<512x128xf32>
    %c0_3 = arith.constant 0 : index
    %c0_4 = arith.constant 0 : index
    %3 = vector.load %arg3[%c0_3, %c0_4] : memref<4x128xf32, #tpu.memory_space<vmem>>, vector<4x128xf32>
    %4 = vector.extract_strided_slice %3 {offsets = [0, 0], sizes = [1, 128], strides = [1, 1]} : vector<4x128xf32> to vector<1x128xf32>
    %5 = vector.extract_strided_slice %3 {offsets = [1, 0], sizes = [1, 128], strides = [1, 1]} : vector<4x128xf32> to vector<1x128xf32>
    %6 = vector.extract_strided_slice %3 {offsets = [2, 0], sizes = [1, 128], strides = [1, 1]} : vector<4x128xf32> to vector<1x128xf32>
    %7 = vector.extract_strided_slice %3 {offsets = [3, 0], sizes = [1, 128], strides = [1, 1]} : vector<4x128xf32> to vector<1x128xf32>
    %8 = vector.broadcast %4 : vector<1x128xf32> to vector<512x128xf32>
    %9 = arith.mulf %2, %8 : vector<512x128xf32>
    %10 = vector.broadcast %5 : vector<1x128xf32> to vector<512x128xf32>
    %11 = arith.addf %9, %10 : vector<512x128xf32>
    %cst_5 = arith.constant 0.000000e+00 : f32
    %12 = vector.broadcast %cst_5 : f32 to vector<1x128xf32>
    %13 = arith.cmpf ogt, %6, %12 : vector<1x128xf32>
    %cst_6 = arith.constant 0.000000e+00 : f32
    %14 = vector.broadcast %cst_6 : f32 to vector<512x128xf32>
    %15 = arith.maximumf %11, %14 : vector<512x128xf32>
    %16 = vector.shape_cast %13 : vector<1x128xi1> to vector<1x128xi1>
    %17 = vector.broadcast %16 : vector<1x128xi1> to vector<512x128xi1>
    %18 = arith.select %17, %15, %11 : vector<512x128xi1>, vector<512x128xf32>
    %c0_7 = arith.constant 0 : index
    %c0_8 = arith.constant 0 : index
    %19 = vector.load %arg4[%c0_7, %c0_8] : memref<512x128xf32, #tpu.memory_space<vmem>>, vector<512x128xf32>
    %20 = arith.addf %18, %19 : vector<512x128xf32>
    %cst_9 = arith.constant 0.000000e+00 : f32
    %21 = vector.broadcast %cst_9 : f32 to vector<1x128xf32>
    %22 = arith.cmpf ogt, %7, %21 : vector<1x128xf32>
    %cst_10 = arith.constant 0.000000e+00 : f32
    %23 = vector.broadcast %cst_10 : f32 to vector<512x128xf32>
    %24 = arith.maximumf %20, %23 : vector<512x128xf32>
    %25 = vector.shape_cast %22 : vector<1x128xi1> to vector<1x128xi1>
    %26 = vector.broadcast %25 : vector<1x128xi1> to vector<512x128xi1>
    %27 = arith.select %26, %24, %20 : vector<512x128xi1>, vector<512x128xf32>
    %c0_11 = arith.constant 0 : index
    %c0_12 = arith.constant 0 : index
    %28 = vector.load %arg5[%c0_11, %c0_12] : memref<512x128xf32, #tpu.memory_space<vmem>>, vector<512x128xf32>
    tpu.vector_store %arg5[%c0_11, %c0_12], %27 {strides = array<i32>} : memref<512x128xf32, #tpu.memory_space<vmem>>, vector<512x128xf32>,
    return
  }
  func.func @transform_0(%arg0: i32) -> (i32, i32) {
    %c0_i32 = arith.constant 0 : i32
    %c0_i32_0 = arith.constant 0 : i32
    %c0_i32_1 = arith.constant 0 : i32
    return %c0_i32, %c0_i32_0 : i32, i32
  }
  func.func @transform_1(%arg0: i32) -> (i32, i32) {
    %c0_i32 = arith.constant 0 : i32
    %c0_i32_0 = arith.constant 0 : i32
    return %c0_i32, %arg0 : i32, i32
  }
  func.func @transform_2(%arg0: i32) -> (i32, i32) {
    %c0_i32 = arith.constant 0 : i32
    %c0_i32_0 = arith.constant 0 : i32
    return %c0_i32, %arg0 : i32, i32
  }
  func.func @transform_3(%arg0: i32) -> (i32, i32) {
    %c0_i32 = arith.constant 0 : i32
    %c0_i32_0 = arith.constant 0 : i32
    return %c0_i32, %arg0 : i32, i32
  }
  func.func @transform_4(%arg0: i32) -> (i32, i32) {
    %c0_i32 = arith.constant 0 : i32
    %c0_i32_0 = arith.constant 0 : i32
    return %c0_i32, %arg0 : i32, i32
  }
}

</mosaic_0001>

<bundles_post_ra>
// kernel: tpu_custom_call.1
= control target key start
LH: loop header
LB: loop body
LE: loop exit
PB: predicated region body
PF: predicated region fallthrough
CT: control target
= control target key end

     0   :  { %9 = vsyncpa [#allocation3], 0  ;;  %s2275_s0 = inlined_call_operand.vmem [shape: bf16[512,27], index: 0, kind: input, shape index: {}]   ;;  %s2276_s1 = inlined_call_operand.vmem [shape: bf16[27,128], index: 1, kind: input, shape index: {}]   ;;  %s2277_s2 = inlined_call_operand.vmem [shape: f32[4,128], index: 2, kind: input, shape index: {}]   ;;  %s2278_s3 = inlined_call_operand.hbm [shape: f32[512,128], index: 3, kind: input, shape index: {}]   ;;  %s2279_s4 = inlined_call_operand.hbm [shape: f32[512,128], index: 4, kind: output, shape index: {}]  }
   0x1   :  { %10 = vsyncpa [#allocation4], 0  ;;  %s1539_s15 = smov [#allocation2]   ;;  %s1491_s19 = scalar_lea.hbm %s2278_s3, 8192 }
   0x2   :  { %s22_s16 = sshll.u32 %s1539_s15, 4  ;;  %p1492_p0 = scmp.ne.s32.totalorder %s2278_s3, %s1491_s19  ;;  %s23_s16 = int_to_ptr.vmem [resolvable:$true] %s22_s16 }
   0x3   :  { %p1495_p1 = scmp.lt.u32.totalorder %s1491_s19, %s2278_s3 }
   0x5   :  { %p1497_p2 = pnand %p1495_p1, %p1492_p0 }
   0x7   :  { %1500 = shalt.err (!%p1497_p2)
}
   0x8   :  { %s1501_s24 = scalar_lea.vmem %s23_s16, 8192  ;;  %p1506_p4 = scmp.lt.s32.totalorder %s23_s16, %s23_s16 }
   0x9   :  { %p1502_p3 = scmp.ne.s32.totalorder %s23_s16, %s1501_s24  ;;  %p1507_p5 = scmp.lt.s32.totalorder %s1501_s24, %s1501_s24 }
   0xb   :  { %p1508_p6 = por %p1507_p5, %p1506_p4 }
   0xd   :  { %p1509_p7 = pnand %p1508_p6, %p1502_p3 }
   0xf   :  { %1512 = shalt.err (!%p1509_p7)
}
  0x10   :  { %s1540_s25 = smov 128   ;;  %s1541_s26 = smov 8  }
  0x11   :  { %28 = dma.hbm_to_vmem [thread:$0]  %s2278_s3, 8192, %s23_s16, [#allocation3], %s1540_s25, %s1540_s25, %s1541_s26  }
  0x12   :  { %1535 = dma.done.wait [#allocation3], 8192  }
  0x13   :  { %1536 = vsyncadd [#allocation3], 4294959104  ;;  %vm369_vm0 = vcmask 1044480   ;;  %vm370_vm1 = vcmask 1045504   ;;  %v1542_v0 = vmov 65535   ;;  %vm272_vm2 = vcmask 220160  }
  0x14   :  { %v371_v1 = vsel %vm369_vm0, 4294967295, %v1542_v0  ;;  %v1457_v2 = vld [vmem:[%s2276_s1] sm:$0xff]   ;;  %v1458_v4 = vld [vmem:[%s2276_s1 + $0x8] sm:$0x3f]   ;;  %v1463_v10 = vld [vmem:[%s2275_s0 + $0x10] sm:$0xff]   ;;  %v666_v38 = vlaneseq  ;;  %v1543_v45 = vmov 0  }
  0x15   :  { %v372_v3 = vsel %vm370_vm1, %v371_v1, 0  ;;  %1379 = vmatprep.subr.bf16.mxu0 %v1457_v2  ;;  %1447 = vmatprep.subr.bf16.mxu1 %v1457_v2  ;;  %v1459_v5 = vld [vmem:[%s2275_s0] sm:$0xff]   ;;  %v1461_v8 = vld [vmem:[%s2275_s0 + $0x8] sm:$0xff]   ;;  %v1464_v11 = vld [vmem:[%s2275_s0 + $0x90] sm:$0xff]  }
  0x16   :  { %1380 = vmatpush3.bf16.msra.mxu0 %v1457_v2  ;;  %1449 = vmatpush3.bf16.msra.mxu1 %v1457_v2  ;;  %v374_v6 = vand.u32 %v1458_v4, %v372_v3  ;;  %v1460_v7 = vld [vmem:[%s2275_s0 + $0x80] sm:$0xff]   ;;  %v1462_v9 = vld [vmem:[%s2275_s0 + $0x88] sm:$0xff]   ;;  %v1465_v12 = vld [vmem:[%s2275_s0 + $0x18] sm:$0xff]   ;;  %v667_v39 = vshrl.u32 %v666_v38, 7 }
  0x17   :  { %1383 = vmatprep.mubr.msk.bf16.mxu0 %vm272_vm2, %v1459_v5  ;;  %1415 = vmatprep.mubr.msk.bf16.mxu1 %vm272_vm2, %v1460_v7  ;;  %v1466_v13 = vld [vmem:[%s2275_s0 + $0x98] sm:$0xff]   ;;  %v1467_v14 = vld [vmem:[%s2275_s0 + $0x20] sm:$0xff]   ;;  %v1469_v16 = vld [vmem:[%s2275_s0 + $0x28] sm:$0xff]  }
  0x18   :  { %1381 = vmatprep.subr.bf16.mxu0 %v374_v6  ;;  %1448 = vmatprep.subr.bf16.mxu1 %v374_v6  ;;  %v1468_v15 = vld [vmem:[%s2275_s0 + $0xa0] sm:$0xff]   ;;  %v1470_v17 = vld [vmem:[%s2275_s0 + $0xa8] sm:$0xff]   ;;  %v1471_v18 = vld [vmem:[%s2275_s0 + $0x30] sm:$0xff]   ;;  %v668_v41 = vsub.s32 0, %v667_v39  ;;  %v870_v42 = vsub.s32 2, %v667_v39  ;;  %v1131_v43 = vsub.s32 3, %v667_v39 }
  0x19   :  { %v1472_v19 = vld [vmem:[%s2275_s0 + $0xb0] sm:$0xff]   ;;  %v1473_v20 = vld [vmem:[%s2275_s0 + $0x38] sm:$0xff]   ;;  %v1475_v22 = vld [vmem:[%s2275_s0 + $0x40] sm:$0xff]   ;;  %v736_v44 = vsub.s32 1, %v667_v39 }
  0x1a   :  { %1382 = vmatpush3.bf16.msra.mxu0 %v374_v6  ;;  %1450 = vmatpush3.bf16.msra.mxu1 %v374_v6  ;;  %v1474_v21 = vld [vmem:[%s2275_s0 + $0xb8] sm:$0xff]   ;;  %v1476_v23 = vld [vmem:[%s2275_s0 + $0xc0] sm:$0xff]   ;;  %v1477_v24 = vld [vmem:[%s2275_s0 + $0x48] sm:$0xff]  }
  0x1b   :  { %v1478_v25 = vld [vmem:[%s2275_s0 + $0xc8] sm:$0xff]   ;;  %v1479_v26 = vld [vmem:[%s2275_s0 + $0x50] sm:$0xff]   ;;  %v1481_v28 = vld [vmem:[%s2275_s0 + $0x58] sm:$0xff]  }
  0x1c   :  { %v1480_v27 = vld [vmem:[%s2275_s0 + $0xd0] sm:$0xff]   ;;  %v1482_v29 = vld [vmem:[%s2275_s0 + $0xd8] sm:$0xff]   ;;  %v1483_v30 = vld [vmem:[%s2275_s0 + $0x60] sm:$0xff]  }
  0x1d   :  { %1384 = vmatmul.mubr.msk.bf16.vlgmr.msra.gmra.mrb[0].mxu0 %vm272_vm2, %v1461_v8  ;;  %1416 = vmatmul.mubr.msk.bf16.vlgmr.msra.gmra.mrb[0].mxu1 %vm272_vm2, %v1462_v9  ;;  %v1484_v31 = vld [vmem:[%s2275_s0 + $0xe0] sm:$0xff]   ;;  %v1485_v32 = vld [vmem:[%s2275_s0 + $0x68] sm:$0xff]   ;;  %v1487_v34 = vld [vmem:[%s2275_s0 + $0x70] sm:$0xff]  }
  0x1e   :  { %1387 = vmatprep.mubr.msk.bf16.mxu0 %vm272_vm2, %v1463_v10  ;;  %1419 = vmatprep.mubr.msk.bf16.mxu1 %vm272_vm2, %v1464_v11  ;;  %v1486_v33 = vld [vmem:[%s2275_s0 + $0xe8] sm:$0xff]   ;;  %v1488_v35 = vld [vmem:[%s2275_s0 + $0xf0] sm:$0xff]   ;;  %v1489_v36 = vld [vmem:[%s2275_s0 + $0x78] sm:$0xff]  }
  0x1f   :  { %v1490_v37 = vld [vmem:[%s2275_s0 + $0xf8] sm:$0xff]   ;;  %v665_v40 = vld [vmem:[%s2277_s2] sm:$0xf]  ;;  %v939_v8 = vld [vmem:[#allocation2 + $0x10] sm:$0xff]  ;;  %s1544_s0 = smov [#allocation5]  }
  0x20   :  { %vm802_vm3 = vcmp.gt.f32.partialorder %v665_v40, 0.0  ;;  %v1722_v47 = vrot.slane %v665_v40, %v668_v41  ;;  %v1728_v50 = vrot.slane %v665_v40, %v736_v44  ;;  %v971_v10 = vld [vmem:[#allocation2 + $0x110] sm:$0xff]  ;;  %v938_v41 = vld [vmem:[#allocation2 + $0x8] sm:$0xff]  ;;  %s1267_s2 = sshll.u32 %s1544_s0, 4  ;;  %s1268_s2 = int_to_ptr.vmem [resolvable:$true] %s1267_s2 }
  0x21   :  { %v867_v46 = vsel %vm802_vm3, 1, %v1543_v45  ;;  %s1513_s19 = scalar_lea.vmem %s1268_s2, 8192  ;;  %p1518_p9 = scmp.lt.s32.totalorder %s1268_s2, %s1268_s2 }
  0x22   :  { %v1724_v48 = vrot.slane %v867_v46, %v870_v42  ;;  %v1726_v49 = vrot.slane %v867_v46, %v1131_v43  ;;  %v970_v42 = vld [vmem:[#allocation2 + $0x108] sm:$0xff]  ;;  %p1514_p8 = scmp.ne.s32.totalorder %s1268_s2, %s1513_s19  ;;  %p1519_p10 = scmp.lt.s32.totalorder %s1513_s19, %s1513_s19 }
  0x24   :  { %vm872_vm4 = vcmp.eq.s32.totalorder %v1724_v48, 1  ;;  %vm1133_vm5 = vcmp.eq.s32.totalorder %v1726_v49, 1  ;;  %p1520_p11 = por %p1519_p10, %p1518_p9 }
  0x25   :  { %1388 = vmatmul.mubr.msk.bf16.gmra.mrb[4].mxu0 %vm272_vm2, %v1465_v12  ;;  %1420 = vmatmul.mubr.msk.bf16.gmra.mrb[4].mxu1 %vm272_vm2, %v1466_v13 }
  0x26   :  { %1391 = vmatprep.mubr.msk.bf16.mxu0 %vm272_vm2, %v1467_v14  ;;  %1423 = vmatprep.mubr.msk.bf16.mxu1 %vm272_vm2, %v1468_v15  ;;  %v937_v14 = vld [vmem:[#allocation2] sm:$0xff]  ;;  %p1521_p12 = pnand %p1520_p11, %p1514_p8 }
  0x2d   :  { %1392 = vmatmul.mubr.msk.bf16.gmra.mrb[8].mxu0 %vm272_vm2, %v1469_v16  ;;  %1424 = vmatmul.mubr.msk.bf16.gmra.mrb[8].mxu1 %vm272_vm2, %v1470_v17  ;;  %v969_v16 = vld [vmem:[#allocation2 + $0x100] sm:$0xff] }
  0x2e   :  { %1395 = vmatprep.mubr.msk.bf16.mxu0 %vm272_vm2, %v1471_v18  ;;  %1427 = vmatprep.mubr.msk.bf16.mxu1 %vm272_vm2, %v1472_v19 }
  0x35   :  { %1396 = vmatmul.mubr.msk.bf16.gmra.mrb[12].mxu0 %vm272_vm2, %v1473_v20  ;;  %1428 = vmatmul.mubr.msk.bf16.gmra.mrb[12].mxu1 %vm272_vm2, %v1474_v21 }
  0x36   :  { %1399 = vmatprep.mubr.msk.bf16.mxu0 %vm272_vm2, %v1475_v22  ;;  %1431 = vmatprep.mubr.msk.bf16.mxu1 %vm272_vm2, %v1476_v23  ;;  %v940_v22 = vld [vmem:[#allocation2 + $0x18] sm:$0xff] }
  0x3d   :  { %1400 = vmatmul.mubr.msk.bf16.gmra.mrb[16].mxu0 %vm272_vm2, %v1477_v24  ;;  %1432 = vmatmul.mubr.msk.bf16.gmra.mrb[16].mxu1 %vm272_vm2, %v1478_v25  ;;  %v972_v24 = vld [vmem:[#allocation2 + $0x118] sm:$0xff] }
  0x3e   :  { %1403 = vmatprep.mubr.msk.bf16.mxu0 %vm272_vm2, %v1479_v26  ;;  %1435 = vmatprep.mubr.msk.bf16.mxu1 %vm272_vm2, %v1480_v27 }
  0x45   :  { %1404 = vmatmul.mubr.msk.bf16.gmra.mrb[20].mxu0 %vm272_vm2, %v1481_v28  ;;  %1436 = vmatmul.mubr.msk.bf16.gmra.mrb[20].mxu1 %vm272_vm2, %v1482_v29 }
  0x46   :  { %1407 = vmatprep.mubr.msk.bf16.mxu0 %vm272_vm2, %v1483_v30  ;;  %1439 = vmatprep.mubr.msk.bf16.mxu1 %vm272_vm2, %v1484_v31 }
  0x4d   :  { %1408 = vmatmul.mubr.msk.bf16.gmra.mrb[24].mxu0 %vm272_vm2, %v1485_v32  ;;  %1440 = vmatmul.mubr.msk.bf16.gmra.mrb[24].mxu1 %vm272_vm2, %v1486_v33 }
  0x4e   :  { %1411 = vmatprep.mubr.msk.bf16.mxu0 %vm272_vm2, %v1487_v34  ;;  %1443 = vmatprep.mubr.msk.bf16.mxu1 %vm272_vm2, %v1488_v35 }
  0x55   :  { %1412 = vmatmul.mubr.msk.bf16.gmra.mrb[28].mxu0 %vm272_vm2, %v1489_v36  ;;  %1444 = vmatmul.mubr.msk.bf16.gmra.mrb[28].mxu1 %vm272_vm2, %v1490_v37 }
  0xf0   :  { %v1385_v51 = vpop.f32.mrb[0].mxu0  ;;  %v1417_v52 = vpop.f32.mrb[0].mxu1 }
  0xf1   :  { %v672_v53 = vmul.f32 %v1385_v51, %v1722_v47  ;;  %v704_v54 = vmul.f32 %v1417_v52, %v1722_v47  ;;  %v410_v55 = vpop.f32.mrb[1].mxu0  ;;  %v538_v56 = vpop.f32.mrb[1].mxu1 }
  0xf2   :  { %v670_v57 = vmul.f32 %v1722_v47, %v410_v55  ;;  %v702_v58 = vmul.f32 %v1722_v47, %v538_v56  ;;  %v1386_v59 = vpop.f32.mrb[2].mxu0  ;;  %v1418_v60 = vpop.f32.mrb[2].mxu1 }
  0xf3   :  { %v740_v61 = vadd.f32 %v1728_v50, %v672_v53  ;;  %v772_v62 = vadd.f32 %v1728_v50, %v704_v54  ;;  %v673_v63 = vmul.f32 %v1386_v59, %v1722_v47  ;;  %v705_v0 = vmul.f32 %v1418_v60, %v1722_v47  ;;  %v413_v1 = vpop.f32.mrb[3].mxu0  ;;  %v541_v2 = vpop.f32.mrb[3].mxu1 }
  0xf4   :  { %v738_v3 = vadd.f32 %v1728_v50, %v670_v57  ;;  %v770_v4 = vadd.f32 %v1728_v50, %v702_v58  ;;  %v671_v5 = vmul.f32 %v1722_v47, %v413_v1  ;;  %v703_v6 = vmul.f32 %v1722_v47, %v541_v2 }
  0xf5   :  { %v805_v7 = vmax.f32 %v740_v61, 0.0  ;;  %v837_v9 = vmax.f32 %v772_v62, 0.0  ;;  %v741_v11 = vadd.f32 %v1728_v50, %v673_v63  ;;  %v773_v12 = vadd.f32 %v1728_v50, %v705_v0 }
  0xf6   :  { %v803_v13 = vmax.f32 %v738_v3, 0.0  ;;  %v835_v15 = vmax.f32 %v770_v4, 0.0  ;;  %v739_v17 = vadd.f32 %v1728_v50, %v671_v5  ;;  %v771_v18 = vadd.f32 %v1728_v50, %v703_v6 }
  0xf7   :  { %v875_v19 = vsel %vm872_vm4, %v805_v7, %v740_v61  ;;  %v907_v20 = vsel %vm872_vm4, %v837_v9, %v772_v62  ;;  %v806_v21 = vmax.f32 %v741_v11, 0.0  ;;  %v838_v23 = vmax.f32 %v773_v12, 0.0 }
  0xf8   :  { %v1003_v25 = vadd.f32 %v939_v8, %v875_v19  ;;  %v1035_v26 = vadd.f32 %v971_v10, %v907_v20  ;;  %v873_v27 = vsel %vm872_vm4, %v803_v13, %v738_v3  ;;  %v905_v28 = vsel %vm872_vm4, %v835_v15, %v770_v4  ;;  %v1389_v29 = vpop.f32.mrb[4].mxu0  ;;  %v1421_v30 = vpop.f32.mrb[4].mxu1 }
  0xf9   :  { %v1001_v31 = vadd.f32 %v937_v14, %v873_v27  ;;  %v1033_v32 = vadd.f32 %v969_v16, %v905_v28  ;;  %v876_v33 = vsel %vm872_vm4, %v806_v21, %v741_v11  ;;  %v908_v34 = vsel %vm872_vm4, %v838_v23, %v773_v12  ;;  %v426_v35 = vpop.f32.mrb[5].mxu0  ;;  %v554_v36 = vpop.f32.mrb[5].mxu1  ;;  %v943_v14 = vld [vmem:[#allocation2 + $0x30] sm:$0xff]  ;;  %v941_v23 = vld [vmem:[#allocation2 + $0x20] sm:$0xff] }
  0xfa   :  { %v1067_v37 = vmax.f32 %v1003_v25, 0.0  ;;  %v1099_v38 = vmax.f32 %v1035_v26, 0.0  ;;  %v1004_v39 = vadd.f32 %v940_v22, %v876_v33  ;;  %v1036_v40 = vadd.f32 %v972_v24, %v908_v34  ;;  %v1390_v43 = vpop.f32.mrb[6].mxu0  ;;  %v1422_v44 = vpop.f32.mrb[6].mxu1  ;;  %v975_v22 = vld [vmem:[#allocation2 + $0x130] sm:$0xff]  ;;  %v973_v24 = vld [vmem:[#allocation2 + $0x120] sm:$0xff] }
  0xfb   :  { %v1065_v45 = vmax.f32 %v1001_v31, 0.0  ;;  %v1097_v46 = vmax.f32 %v1033_v32, 0.0  ;;  %v804_v51 = vmax.f32 %v739_v17, 0.0  ;;  %v836_v52 = vmax.f32 %v771_v18, 0.0  ;;  %v429_v53 = vpop.f32.mrb[7].mxu0  ;;  %v557_v54 = vpop.f32.mrb[7].mxu1 }
  0xfc   :  { %v1136_v55 = vsel %vm1133_vm5, %v1067_v37, %v1003_v25  ;;  %v1168_v56 = vsel %vm1133_vm5, %v1099_v38, %v1035_v26  ;;  %v1068_v57 = vmax.f32 %v1004_v39, 0.0  ;;  %v1100_v58 = vmax.f32 %v1036_v40, 0.0 }
  0xfd   :  { %1200 = vst [vmem:[#allocation5 + $0x10] sm:$0xff] %v1136_v55  ;;  %1232 = vst [vmem:[#allocation5 + $0x110] sm:$0xff] %v1168_v56  ;;  %v1134_v59 = vsel %vm1133_vm5, %v1065_v45, %v1001_v31  ;;  %v1166_v60 = vsel %vm1133_vm5, %v1097_v46, %v1033_v32  ;;  %v874_v61 = vsel %vm872_vm4, %v804_v51, %v739_v17  ;;  %v944_v51 = vld [vmem:[#allocation2 + $0x38] sm:$0xff] }
  0xfe   :  { %v906_v62 = vsel %vm872_vm4, %v836_v52, %v771_v18  ;;  %1198 = vst [vmem:[#allocation5] sm:$0xff] %v1134_v59  ;;  %1230 = vst [vmem:[#allocation5 + $0x100] sm:$0xff] %v1166_v60  ;;  %v1137_v63 = vsel %vm1133_vm5, %v1068_v57, %v1004_v39  ;;  %v1169_v0 = vsel %vm1133_vm5, %v1100_v58, %v1036_v40  ;;  %v976_v52 = vld [vmem:[#allocation2 + $0x138] sm:$0xff] }
  0xff   :  { %v1002_v1 = vadd.f32 %v938_v41, %v874_v61  ;;  %v1034_v2 = vadd.f32 %v970_v42, %v906_v62  ;;  %1201 = vst [vmem:[#allocation5 + $0x18] sm:$0xff] %v1137_v63  ;;  %1233 = vst [vmem:[#allocation5 + $0x118] sm:$0xff] %v1169_v0  ;;  %v676_v3 = vmul.f32 %v1389_v29, %v1722_v47 }
 0x100   :  { %v708_v4 = vmul.f32 %v1421_v30, %v1722_v47  ;;  %v674_v5 = vmul.f32 %v1722_v47, %v426_v35  ;;  %v706_v6 = vmul.f32 %v1722_v47, %v554_v36  ;;  %v677_v9 = vmul.f32 %v1390_v43, %v1722_v47  ;;  %v1782_v11 = vpop.f32.mrb[8].mxu0  ;;  %v1784_v12 = vpop.f32.mrb[8].mxu1 }
 0x101   :  { %v1066_v7 = vmax.f32 %v1002_v1, 0.0  ;;  %v1098_v8 = vmax.f32 %v1034_v2, 0.0  ;;  %v709_v10 = vmul.f32 %v1422_v44, %v1722_v47  ;;  %v744_v13 = vadd.f32 %v1728_v50, %v676_v3  ;;  %v1790_v18 = vpop.f32.mrb[9].mxu0  ;;  %v1792_v19 = vpop.f32.mrb[9].mxu1 }
 0x102   :  { %v776_v15 = vadd.f32 %v1728_v50, %v708_v4  ;;  %v742_v16 = vadd.f32 %v1728_v50, %v674_v5  ;;  %v774_v17 = vadd.f32 %v1728_v50, %v706_v6  ;;  %v745_v25 = vadd.f32 %v1728_v50, %v677_v9  ;;  %v1800_v27 = vpop.f32.mrb[10].mxu0  ;;  %v1802_v28 = vpop.f32.mrb[10].mxu1  ;;  %v974_v4 = vld [vmem:[#allocation2 + $0x128] sm:$0xff] }
 0x103   :  { %v1135_v20 = vsel %vm1133_vm5, %v1066_v7, %v1002_v1  ;;  %v1167_v21 = vsel %vm1133_vm5, %v1098_v8, %v1034_v2  ;;  %v777_v26 = vadd.f32 %v1728_v50, %v709_v10  ;;  %v809_v29 = vmax.f32 %v744_v13, 0.0  ;;  %v1804_v33 = vpop.f32.mrb[11].mxu0  ;;  %v1806_v34 = vpop.f32.mrb[11].mxu1  ;;  %v942_v2 = vld [vmem:[#allocation2 + $0x28] sm:$0xff] }
 0x104   :  { %1199 = vst [vmem:[#allocation5 + $0x8] sm:$0xff] %v1135_v20  ;;  %1231 = vst [vmem:[#allocation5 + $0x108] sm:$0xff] %v1167_v21  ;;  %v841_v30 = vmax.f32 %v776_v15, 0.0  ;;  %v807_v31 = vmax.f32 %v742_v16, 0.0  ;;  %v839_v32 = vmax.f32 %v774_v17, 0.0  ;;  %v810_v35 = vmax.f32 %v745_v25, 0.0 }
 0x105   :  { %v842_v36 = vmax.f32 %v777_v26, 0.0  ;;  %v675_v37 = vmul.f32 %v1722_v47, %v429_v53  ;;  %v707_v38 = vmul.f32 %v1722_v47, %v557_v54  ;;  %v879_v39 = vsel %vm872_vm4, %v809_v29, %v744_v13 }
 0x106   :  { %v911_v40 = vsel %vm872_vm4, %v841_v30, %v776_v15  ;;  %v877_v41 = vsel %vm872_vm4, %v807_v31, %v742_v16  ;;  %v909_v42 = vsel %vm872_vm4, %v839_v32, %v774_v17  ;;  %v1007_v43 = vadd.f32 %v943_v14, %v879_v39 }
 0x107   :  { %v1039_v44 = vadd.f32 %v975_v22, %v911_v40  ;;  %v1005_v45 = vadd.f32 %v941_v23, %v877_v41  ;;  %v1037_v46 = vadd.f32 %v973_v24, %v909_v42  ;;  %v880_v53 = vsel %vm872_vm4, %v810_v35, %v745_v25  ;;  %v947_v42 = vld [vmem:[#allocation2 + $0x50] sm:$0xff] }
 0x108   :  { %v912_v54 = vsel %vm872_vm4, %v842_v36, %v777_v26  ;;  %v743_v55 = vadd.f32 %v1728_v50, %v675_v37  ;;  %v775_v56 = vadd.f32 %v1728_v50, %v707_v38  ;;  %v1071_v57 = vmax.f32 %v1007_v43, 0.0  ;;  %v1824_v61 = vpop.f32.mrb[12].mxu0  ;;  %v1826_v62 = vpop.f32.mrb[12].mxu1 }
 0x109   :  { %v1103_v58 = vmax.f32 %v1039_v44, 0.0  ;;  %v1069_v59 = vmax.f32 %v1005_v45, 0.0  ;;  %v1101_v60 = vmax.f32 %v1037_v46, 0.0  ;;  %v1008_v63 = vadd.f32 %v944_v51, %v880_v53  ;;  %v1828_v5 = vpop.f32.mrb[13].mxu0  ;;  %v1830_v6 = vpop.f32.mrb[13].mxu1  ;;  %v945_v51 = vld [vmem:[#allocation2 + $0x40] sm:$0xff] }
 0x10a   :  { %v1040_v0 = vadd.f32 %v976_v52, %v912_v54  ;;  %v808_v1 = vmax.f32 %v743_v55, 0.0  ;;  %v840_v3 = vmax.f32 %v775_v56, 0.0  ;;  %v1140_v7 = vsel %vm1133_vm5, %v1071_v57, %v1007_v43  ;;  %v1840_v13 = vpop.f32.mrb[14].mxu0  ;;  %v1842_v14 = vpop.f32.mrb[14].mxu1 }
 0x10b   :  { %v1172_v8 = vsel %vm1133_vm5, %v1103_v58, %v1039_v44  ;;  %v1138_v9 = vsel %vm1133_vm5, %v1069_v59, %v1005_v45  ;;  %v1170_v10 = vsel %vm1133_vm5, %v1101_v60, %v1037_v46  ;;  %1204 = vst [vmem:[#allocation5 + $0x30] sm:$0xff] %v1140_v7  ;;  %v1072_v15 = vmax.f32 %v1008_v63, 0.0  ;;  %v1848_v21 = vpop.f32.mrb[15].mxu0  ;;  %v1850_v22 = vpop.f32.mrb[15].mxu1  ;;  %v979_v44 = vld [vmem:[#allocation2 + $0x150] sm:$0xff] }
 0x10c   :  { %1236 = vst [vmem:[#allocation5 + $0x130] sm:$0xff] %v1172_v8  ;;  %1202 = vst [vmem:[#allocation5 + $0x20] sm:$0xff] %v1138_v9  ;;  %v1104_v16 = vmax.f32 %v1040_v0, 0.0  ;;  %v878_v17 = vsel %vm872_vm4, %v808_v1, %v743_v55  ;;  %v910_v20 = vsel %vm872_vm4, %v840_v3, %v775_v56  ;;  %v680_v25 = vmul.f32 %v1782_v11, %v1722_v47 }
 0x10d   :  { %1234 = vst [vmem:[#allocation5 + $0x120] sm:$0xff] %v1170_v10  ;;  %v1006_v23 = vadd.f32 %v942_v2, %v878_v17  ;;  %v1038_v24 = vadd.f32 %v974_v4, %v910_v20  ;;  %v712_v26 = vmul.f32 %v1784_v12, %v1722_v47  ;;  %v1141_v29 = vsel %vm1133_vm5, %v1072_v15, %v1008_v63 }
 0x10e   :  { %v1173_v30 = vsel %vm1133_vm5, %v1104_v16, %v1040_v0  ;;  %v678_v31 = vmul.f32 %v1722_v47, %v1790_v18  ;;  %v710_v32 = vmul.f32 %v1722_v47, %v1792_v19  ;;  %1205 = vst [vmem:[#allocation5 + $0x38] sm:$0xff] %v1141_v29  ;;  %v748_v11 = vadd.f32 %v1728_v50, %v680_v25  ;;  %v980_v16 = vld [vmem:[#allocation2 + $0x158] sm:$0xff] }
 0x10f   :  { %1237 = vst [vmem:[#allocation5 + $0x138] sm:$0xff] %v1173_v30  ;;  %v1070_v35 = vmax.f32 %v1006_v23, 0.0  ;;  %v1102_v36 = vmax.f32 %v1038_v24, 0.0  ;;  %v780_v12 = vadd.f32 %v1728_v50, %v712_v26  ;;  %v681_v39 = vmul.f32 %v1800_v27, %v1722_v47 }
 0x110   :  { %v746_v37 = vadd.f32 %v1728_v50, %v678_v31  ;;  %v778_v38 = vadd.f32 %v1728_v50, %v710_v32  ;;  %v713_v18 = vmul.f32 %v1802_v28, %v1722_v47  ;;  %v813_v41 = vmax.f32 %v748_v11, 0.0  ;;  %v1876_v45 = vpop.f32.mrb[16].mxu0  ;;  %v1878_v46 = vpop.f32.mrb[16].mxu1  ;;  %v977_v28 = vld [vmem:[#allocation2 + $0x140] sm:$0xff] }
 0x111   :  { %v1139_v19 = vsel %vm1133_vm5, %v1070_v35, %v1006_v23  ;;  %v1171_v40 = vsel %vm1133_vm5, %v1102_v36, %v1038_v24  ;;  %v845_v43 = vmax.f32 %v780_v12, 0.0  ;;  %v749_v53 = vadd.f32 %v1728_v50, %v681_v39  ;;  %v1882_v55 = vpop.f32.mrb[17].mxu0  ;;  %v1884_v56 = vpop.f32.mrb[17].mxu1 }
 0x112   :  { %1203 = vst [vmem:[#allocation5 + $0x28] sm:$0xff] %v1139_v19  ;;  %1235 = vst [vmem:[#allocation5 + $0x128] sm:$0xff] %v1171_v40  ;;  %v811_v27 = vmax.f32 %v746_v37, 0.0  ;;  %v843_v52 = vmax.f32 %v778_v38, 0.0  ;;  %v781_v54 = vadd.f32 %v1728_v50, %v713_v18  ;;  %v883_v57 = vsel %vm872_vm4, %v813_v41, %v748_v11  ;;  %v1894_v63 = vpop.f32.mrb[18].mxu0  ;;  %v1896_v0 = vpop.f32.mrb[18].mxu1 }
 0x113   :  { %v915_v58 = vsel %vm872_vm4, %v845_v43, %v780_v12  ;;  %v679_v59 = vmul.f32 %v1722_v47, %v1804_v33  ;;  %v711_v60 = vmul.f32 %v1722_v47, %v1806_v34  ;;  %v1011_v1 = vadd.f32 %v947_v42, %v883_v57  ;;  %v1902_v7 = vpop.f32.mrb[19].mxu0  ;;  %v1904_v8 = vpop.f32.mrb[19].mxu1  ;;  %v948_v34 = vld [vmem:[#allocation2 + $0x58] sm:$0xff]  ;;  %v978_v18 = vld [vmem:[#allocation2 + $0x148] sm:$0xff] }
 0x114   :  { %v1043_v2 = vadd.f32 %v979_v44, %v915_v58  ;;  %v881_v3 = vsel %vm872_vm4, %v811_v27, %v746_v37  ;;  %v913_v4 = vsel %vm872_vm4, %v843_v52, %v778_v38  ;;  %v814_v10 = vmax.f32 %v749_v53, 0.0  ;;  %v946_v38 = vld [vmem:[#allocation2 + $0x48] sm:$0xff] }
 0x115   :  { %v1009_v33 = vadd.f32 %v945_v51, %v881_v3  ;;  %v1041_v9 = vadd.f32 %v977_v28, %v913_v4  ;;  %v846_v15 = vmax.f32 %v781_v54, 0.0  ;;  %v1075_v17 = vmax.f32 %v1011_v1, 0.0 }
 0x116   :  { %v1107_v20 = vmax.f32 %v1043_v2, 0.0  ;;  %v747_v23 = vadd.f32 %v1728_v50, %v679_v59  ;;  %v779_v24 = vadd.f32 %v1728_v50, %v711_v60  ;;  %v884_v29 = vsel %vm872_vm4, %v814_v10, %v749_v53  ;;  %v951_v10 = vld [vmem:[#allocation2 + $0x70] sm:$0xff] }
 0x117   :  { %v1073_v25 = vmax.f32 %v1009_v33, 0.0  ;;  %v1105_v26 = vmax.f32 %v1041_v9, 0.0  ;;  %v916_v30 = vsel %vm872_vm4, %v846_v15, %v781_v54  ;;  %v1144_v31 = vsel %vm1133_vm5, %v1075_v17, %v1011_v1 }
 0x118   :  { %v1176_v32 = vsel %vm1133_vm5, %v1107_v20, %v1043_v2  ;;  %v1012_v35 = vadd.f32 %v948_v34, %v884_v29  ;;  %v1044_v36 = vadd.f32 %v980_v16, %v916_v30  ;;  %1208 = vst [vmem:[#allocation5 + $0x50] sm:$0xff] %v1144_v31  ;;  %v812_v37 = vmax.f32 %v747_v23, 0.0  ;;  %v1920_v19 = vpop.f32.mrb[20].mxu0  ;;  %v1922_v40 = vpop.f32.mrb[20].mxu1  ;;  %v983_v34 = vld [vmem:[#allocation2 + $0x170] sm:$0xff] }
 0x119   :  { %1240 = vst [vmem:[#allocation5 + $0x150] sm:$0xff] %v1176_v32  ;;  %v1142_v11 = vsel %vm1133_vm5, %v1073_v25, %v1009_v33  ;;  %v1174_v12 = vsel %vm1133_vm5, %v1105_v26, %v1041_v9  ;;  %v844_v39 = vmax.f32 %v779_v24, 0.0  ;;  %v684_v43 = vmul.f32 %v1824_v61, %v1722_v47  ;;  %v1928_v27 = vpop.f32.mrb[21].mxu0  ;;  %v1930_v51 = vpop.f32.mrb[21].mxu1  ;;  %v981_v26 = vld [vmem:[#allocation2 + $0x160] sm:$0xff] }
 0x11a   :  { %1206 = vst [vmem:[#allocation5 + $0x40] sm:$0xff] %v1142_v11  ;;  %1238 = vst [vmem:[#allocation5 + $0x140] sm:$0xff] %v1174_v12  ;;  %v1076_v41 = vmax.f32 %v1012_v35, 0.0  ;;  %v1108_v42 = vmax.f32 %v1044_v36, 0.0  ;;  %v716_v44 = vmul.f32 %v1826_v62, %v1722_v47  ;;  %v882_v52 = vsel %vm872_vm4, %v812_v37, %v747_v23  ;;  %v1940_v61 = vpop.f32.mrb[22].mxu0  ;;  %v1942_v57 = vpop.f32.mrb[22].mxu1 }
 0x11b   :  { %v914_v28 = vsel %vm872_vm4, %v844_v39, %v779_v24  ;;  %v682_v53 = vmul.f32 %v1722_v47, %v1828_v5  ;;  %v714_v54 = vmul.f32 %v1722_v47, %v1830_v6  ;;  %v1010_v59 = vadd.f32 %v946_v38, %v882_v52  ;;  %v1948_v1 = vpop.f32.mrb[23].mxu0  ;;  %v1950_v2 = vpop.f32.mrb[23].mxu1  ;;  %v949_v24 = vld [vmem:[#allocation2 + $0x60] sm:$0xff] }
 0x11c   :  { %v1145_v62 = vsel %vm1133_vm5, %v1076_v41, %v1012_v35  ;;  %v1177_v58 = vsel %vm1133_vm5, %v1108_v42, %v1044_v36  ;;  %v1042_v60 = vadd.f32 %v978_v18, %v914_v28  ;;  %v752_v5 = vadd.f32 %v1728_v50, %v684_v43  ;;  %v984_v28 = vld [vmem:[#allocation2 + $0x178] sm:$0xff] }
 0x11d   :  { %1209 = vst [vmem:[#allocation5 + $0x58] sm:$0xff] %v1145_v62  ;;  %1241 = vst [vmem:[#allocation5 + $0x158] sm:$0xff] %v1177_v58  ;;  %v784_v6 = vadd.f32 %v1728_v50, %v716_v44  ;;  %v750_v3 = vadd.f32 %v1728_v50, %v682_v53  ;;  %v782_v4 = vadd.f32 %v1728_v50, %v714_v54  ;;  %v1074_v33 = vmax.f32 %v1010_v59, 0.0  ;;  %v952_v44 = vld [vmem:[#allocation2 + $0x78] sm:$0xff] }
 0x11e   :  { %v1106_v9 = vmax.f32 %v1042_v60, 0.0  ;;  %v685_v15 = vmul.f32 %v1840_v13, %v1722_v47  ;;  %v717_v16 = vmul.f32 %v1842_v14, %v1722_v47  ;;  %v817_v17 = vmax.f32 %v752_v5, 0.0 }
 0x11f   :  { %v849_v20 = vmax.f32 %v784_v6, 0.0  ;;  %v815_v23 = vmax.f32 %v750_v3, 0.0  ;;  %v847_v25 = vmax.f32 %v782_v4, 0.0  ;;  %v1143_v29 = vsel %vm1133_vm5, %v1074_v33, %v1010_v59 }
 0x120   :  { %v1175_v30 = vsel %vm1133_vm5, %v1106_v9, %v1042_v60  ;;  %v753_v31 = vadd.f32 %v1728_v50, %v685_v15  ;;  %v785_v32 = vadd.f32 %v1728_v50, %v717_v16  ;;  %1207 = vst [vmem:[#allocation5 + $0x48] sm:$0xff] %v1143_v29  ;;  %v887_v13 = vsel %vm872_vm4, %v817_v17, %v752_v5  ;;  %v1974_v11 = vpop.f32.mrb[24].mxu0  ;;  %v1976_v12 = vpop.f32.mrb[24].mxu1 }
 0x121   :  { %1239 = vst [vmem:[#allocation5 + $0x148] sm:$0xff] %v1175_v30  ;;  %v919_v14 = vsel %vm872_vm4, %v849_v20, %v784_v6  ;;  %v885_v35 = vsel %vm872_vm4, %v815_v23, %v750_v3  ;;  %v917_v36 = vsel %vm872_vm4, %v847_v25, %v782_v4  ;;  %v1015_v37 = vadd.f32 %v951_v10, %v887_v13  ;;  %v1978_v41 = vpop.f32.mrb[25].mxu0  ;;  %v1980_v42 = vpop.f32.mrb[25].mxu1 }
 0x122   :  { %v1047_v38 = vadd.f32 %v983_v34, %v919_v14  ;;  %v1013_v39 = vadd.f32 %v949_v24, %v885_v35  ;;  %v1045_v18 = vadd.f32 %v981_v26, %v917_v36  ;;  %v818_v43 = vmax.f32 %v753_v31, 0.0  ;;  %v1986_v62 = vpop.f32.mrb[26].mxu0  ;;  %v1988_v58 = vpop.f32.mrb[26].mxu1  ;;  %v950_v24 = vld [vmem:[#allocation2 + $0x68] sm:$0xff] }
 0x123   :  { %v850_v52 = vmax.f32 %v785_v32, 0.0  ;;  %v683_v53 = vmul.f32 %v1722_v47, %v1848_v21  ;;  %v715_v54 = vmul.f32 %v1722_v47, %v1850_v22  ;;  %v1079_v59 = vmax.f32 %v1015_v37, 0.0  ;;  %v1990_v3 = vpop.f32.mrb[27].mxu0  ;;  %v1992_v4 = vpop.f32.mrb[27].mxu1  ;;  %v982_v26 = vld [vmem:[#allocation2 + $0x168] sm:$0xff] }
 0x124   :  { %v1111_v60 = vmax.f32 %v1047_v38, 0.0  ;;  %v1077_v5 = vmax.f32 %v1013_v39, 0.0  ;;  %v1109_v6 = vmax.f32 %v1045_v18, 0.0  ;;  %v888_v33 = vsel %vm872_vm4, %v818_v43, %v753_v31 }
 0x125   :  { %v920_v21 = vsel %vm872_vm4, %v850_v52, %v785_v32  ;;  %v751_v22 = vadd.f32 %v1728_v50, %v683_v53  ;;  %v783_v9 = vadd.f32 %v1728_v50, %v715_v54  ;;  %v1148_v10 = vsel %vm1133_vm5, %v1079_v59, %v1015_v37  ;;  %v955_v52 = vld [vmem:[#allocation2 + $0x90] sm:$0xff] }
 0x126   :  { %v1180_v34 = vsel %vm1133_vm5, %v1111_v60, %v1047_v38  ;;  %v1146_v15 = vsel %vm1133_vm5, %v1077_v5, %v1013_v39  ;;  %v1178_v16 = vsel %vm1133_vm5, %v1109_v6, %v1045_v18  ;;  %1212 = vst [vmem:[#allocation5 + $0x70] sm:$0xff] %v1148_v10  ;;  %v1016_v17 = vadd.f32 %v952_v44, %v888_v33 }
 0x127   :  { %1244 = vst [vmem:[#allocation5 + $0x170] sm:$0xff] %v1180_v34  ;;  %1210 = vst [vmem:[#allocation5 + $0x60] sm:$0xff] %v1146_v15  ;;  %v1048_v20 = vadd.f32 %v984_v28, %v920_v21  ;;  %v816_v23 = vmax.f32 %v751_v22, 0.0  ;;  %v848_v25 = vmax.f32 %v783_v9, 0.0  ;;  %v688_v29 = vmul.f32 %v1876_v45, %v1722_v47  ;;  %v987_v28 = vld [vmem:[#allocation2 + $0x190] sm:$0xff]  ;;  %v953_v34 = vld [vmem:[#allocation2 + $0x80] sm:$0xff] }
 0x128   :  { %1242 = vst [vmem:[#allocation5 + $0x160] sm:$0xff] %v1178_v16  ;;  %v720_v30 = vmul.f32 %v1878_v46, %v1722_v47  ;;  %v686_v31 = vmul.f32 %v1722_v47, %v1882_v55  ;;  %v718_v32 = vmul.f32 %v1722_v47, %v1884_v56  ;;  %v1080_v13 = vmax.f32 %v1016_v17, 0.0  ;;  %v2020_v37 = vpop.f32.mrb[28].mxu0  ;;  %v2022_v45 = vpop.f32.mrb[28].mxu1  ;;  %v985_v16 = vld [vmem:[#allocation2 + $0x180] sm:$0xff] }
 0x129   :  { %v1112_v14 = vmax.f32 %v1048_v20, 0.0  ;;  %v886_v35 = vsel %vm872_vm4, %v816_v23, %v751_v22  ;;  %v918_v36 = vsel %vm872_vm4, %v848_v25, %v783_v9  ;;  %v756_v39 = vadd.f32 %v1728_v50, %v688_v29  ;;  %v2026_v18 = vpop.f32.mrb[29].mxu0  ;;  %v2028_v56 = vpop.f32.mrb[29].mxu1 }
 0x12a   :  { %v1014_v38 = vadd.f32 %v950_v24, %v886_v35  ;;  %v1046_v46 = vadd.f32 %v982_v26, %v918_v36  ;;  %v788_v55 = vadd.f32 %v1728_v50, %v720_v30  ;;  %v1149_v43 = vsel %vm1133_vm5, %v1080_v13, %v1016_v17  ;;  %v2036_v59 = vpop.f32.mrb[30].mxu0  ;;  %v2038_v60 = vpop.f32.mrb[30].mxu1 }
 0x12b   :  { %v1181_v44 = vsel %vm1133_vm5, %v1112_v14, %v1048_v20  ;;  %v754_v53 = vadd.f32 %v1728_v50, %v686_v31  ;;  %v786_v54 = vadd.f32 %v1728_v50, %v718_v32  ;;  %1213 = vst [vmem:[#allocation5 + $0x78] sm:$0xff] %v1149_v43  ;;  %v821_v33 = vmax.f32 %v756_v39, 0.0  ;;  %v2040_v22 = vpop.f32.mrb[31].mxu0  ;;  %v2042_v9 = vpop.f32.mrb[31].mxu1 }
 0x12c   :  { %1245 = vst [vmem:[#allocation5 + $0x178] sm:$0xff] %v1181_v44  ;;  %v1078_v5 = vmax.f32 %v1014_v38, 0.0  ;;  %v1110_v6 = vmax.f32 %v1046_v46, 0.0  ;;  %v853_v21 = vmax.f32 %v788_v55, 0.0  ;;  %v689_v17 = vmul.f32 %v1894_v63, %v1722_v47  ;;  %v956_v44 = vld [vmem:[#allocation2 + $0x98] sm:$0xff] }
 0x12d   :  { %v819_v10 = vmax.f32 %v754_v53, 0.0  ;;  %v851_v15 = vmax.f32 %v786_v54, 0.0  ;;  %v721_v20 = vmul.f32 %v1896_v0, %v1722_v47  ;;  %v891_v25 = vsel %vm872_vm4, %v821_v33, %v756_v39 }
 0x12e   :  { %v1147_v23 = vsel %vm1133_vm5, %v1078_v5, %v1014_v38  ;;  %v1179_v24 = vsel %vm1133_vm5, %v1110_v6, %v1046_v46  ;;  %v923_v26 = vsel %vm872_vm4, %v853_v21, %v788_v55  ;;  %v1019_v29 = vadd.f32 %v955_v52, %v891_v25 }
 0x12f   :  { %1211 = vst [vmem:[#allocation5 + $0x68] sm:$0xff] %v1147_v23  ;;  %1243 = vst [vmem:[#allocation5 + $0x168] sm:$0xff] %v1179_v24  ;;  %v1051_v30 = vadd.f32 %v987_v28, %v923_v26  ;;  %v889_v63 = vsel %vm872_vm4, %v819_v10, %v754_v53  ;;  %v921_v0 = vsel %vm872_vm4, %v851_v15, %v786_v54  ;;  %v988_v28 = vld [vmem:[#allocation2 + $0x198] sm:$0xff] }
 0x130   :  { %v1017_v31 = vadd.f32 %v953_v34, %v889_v63  ;;  %v1049_v32 = vadd.f32 %v985_v16, %v921_v0  ;;  %v757_v13 = vadd.f32 %v1728_v50, %v689_v17  ;;  %v789_v14 = vadd.f32 %v1728_v50, %v721_v20  ;;  %v954_v16 = vld [vmem:[#allocation2 + $0x88] sm:$0xff] }
 0x131   :  { %v1083_v35 = vmax.f32 %v1019_v29, 0.0  ;;  %v1115_v36 = vmax.f32 %v1051_v30, 0.0  ;;  %v687_v38 = vmul.f32 %v1722_v47, %v1902_v7  ;;  %v719_v46 = vmul.f32 %v1722_v47, %v1904_v8  ;;  %v986_v20 = vld [vmem:[#allocation2 + $0x188] sm:$0xff] }
 0x132   :  { %v1081_v39 = vmax.f32 %v1017_v31, 0.0  ;;  %v1113_v55 = vmax.f32 %v1049_v32, 0.0  ;;  %v822_v43 = vmax.f32 %v757_v13, 0.0  ;;  %v854_v52 = vmax.f32 %v789_v14, 0.0 }
 0x133   :  { %v1152_v53 = vsel %vm1133_vm5, %v1083_v35, %v1019_v29  ;;  %v1184_v54 = vsel %vm1133_vm5, %v1115_v36, %v1051_v30  ;;  %v755_v5 = vadd.f32 %v1728_v50, %v687_v38  ;;  %v787_v6 = vadd.f32 %v1728_v50, %v719_v46  ;;  %v959_v46 = vld [vmem:[#allocation2 + $0xb0] sm:$0xff] }
 0x134   :  { %1216 = vst [vmem:[#allocation5 + $0x90] sm:$0xff] %v1152_v53  ;;  %1248 = vst [vmem:[#allocation5 + $0x190] sm:$0xff] %v1184_v54  ;;  %v1150_v7 = vsel %vm1133_vm5, %v1081_v39, %v1017_v31  ;;  %v1182_v8 = vsel %vm1133_vm5, %v1113_v55, %v1049_v32  ;;  %v892_v33 = vsel %vm872_vm4, %v822_v43, %v757_v13  ;;  %v991_v55 = vld [vmem:[#allocation2 + $0x1b0] sm:$0xff] }
 0x135   :  { %v924_v21 = vsel %vm872_vm4, %v854_v52, %v789_v14  ;;  %1214 = vst [vmem:[#allocation5 + $0x80] sm:$0xff] %v1150_v7  ;;  %1246 = vst [vmem:[#allocation5 + $0x180] sm:$0xff] %v1182_v8  ;;  %v1020_v10 = vadd.f32 %v956_v44, %v892_v33  ;;  %v820_v15 = vmax.f32 %v755_v5, 0.0  ;;  %v852_v17 = vmax.f32 %v787_v6, 0.0  ;;  %v957_v44 = vld [vmem:[#allocation2 + $0xa0] sm:$0xff] }
 0x136   :  { %v1052_v34 = vadd.f32 %v988_v28, %v924_v21  ;;  %v692_v23 = vmul.f32 %v1920_v19, %v1722_v47  ;;  %v724_v24 = vmul.f32 %v1922_v40, %v1722_v47  ;;  %v690_v25 = vmul.f32 %v1722_v47, %v1928_v27  ;;  %v989_v28 = vld [vmem:[#allocation2 + $0x1a0] sm:$0xff] }
 0x137   :  { %v722_v26 = vmul.f32 %v1722_v47, %v1930_v51  ;;  %v1084_v29 = vmax.f32 %v1020_v10, 0.0  ;;  %v890_v63 = vsel %vm872_vm4, %v820_v15, %v755_v5  ;;  %v922_v0 = vsel %vm872_vm4, %v852_v17, %v787_v6 }
 0x138   :  { %v1116_v30 = vmax.f32 %v1052_v34, 0.0  ;;  %v1018_v31 = vadd.f32 %v954_v16, %v890_v63  ;;  %v1050_v32 = vadd.f32 %v986_v20, %v922_v0  ;;  %v760_v19 = vadd.f32 %v1728_v50, %v692_v23  ;;  %v992_v0 = vld [vmem:[#allocation2 + $0x1b8] sm:$0xff] }
 0x139   :  { %v792_v40 = vadd.f32 %v1728_v50, %v724_v24  ;;  %v1153_v27 = vsel %vm1133_vm5, %v1084_v29, %v1020_v10  ;;  %v758_v13 = vadd.f32 %v1728_v50, %v690_v25  ;;  %v790_v14 = vadd.f32 %v1728_v50, %v722_v26 }
 0x13a   :  { %v1185_v51 = vsel %vm1133_vm5, %v1116_v30, %v1052_v34  ;;  %1217 = vst [vmem:[#allocation5 + $0x98] sm:$0xff] %v1153_v27  ;;  %v1082_v35 = vmax.f32 %v1018_v31, 0.0  ;;  %v1114_v36 = vmax.f32 %v1050_v32, 0.0  ;;  %v825_v38 = vmax.f32 %v760_v19, 0.0  ;;  %v960_v30 = vld [vmem:[#allocation2 + $0xb8] sm:$0xff] }
 0x13b   :  { %1249 = vst [vmem:[#allocation5 + $0x198] sm:$0xff] %v1185_v51  ;;  %v857_v39 = vmax.f32 %v792_v40, 0.0  ;;  %v823_v43 = vmax.f32 %v758_v13, 0.0  ;;  %v855_v52 = vmax.f32 %v790_v14, 0.0  ;;  %v693_v53 = vmul.f32 %v1940_v61, %v1722_v47 }
 0x13c   :  { %v725_v54 = vmul.f32 %v1942_v57, %v1722_v47  ;;  %v1151_v5 = vsel %vm1133_vm5, %v1082_v35, %v1018_v31  ;;  %v1183_v6 = vsel %vm1133_vm5, %v1114_v36, %v1050_v32  ;;  %v895_v7 = vsel %vm872_vm4, %v825_v38, %v760_v19  ;;  %v958_v36 = vld [vmem:[#allocation2 + $0xa8] sm:$0xff] }
 0x13d   :  { %v927_v8 = vsel %vm872_vm4, %v857_v39, %v792_v40  ;;  %1215 = vst [vmem:[#allocation5 + $0x88] sm:$0xff] %v1151_v5  ;;  %1247 = vst [vmem:[#allocation5 + $0x188] sm:$0xff] %v1183_v6  ;;  %v1023_v33 = vadd.f32 %v959_v46, %v895_v7  ;;  %v893_v61 = vsel %vm872_vm4, %v823_v43, %v758_v13  ;;  %v990_v46 = vld [vmem:[#allocation2 + $0x1a8] sm:$0xff] }
 0x13e   :  { %v1055_v21 = vadd.f32 %v991_v55, %v927_v8  ;;  %v925_v57 = vsel %vm872_vm4, %v855_v52, %v790_v14  ;;  %v1021_v10 = vadd.f32 %v957_v44, %v893_v61  ;;  %v761_v15 = vadd.f32 %v1728_v50, %v693_v53 }
 0x13f   :  { %v1053_v34 = vadd.f32 %v989_v28, %v925_v57  ;;  %v793_v16 = vadd.f32 %v1728_v50, %v725_v54  ;;  %v1087_v17 = vmax.f32 %v1023_v33, 0.0  ;;  %v691_v23 = vmul.f32 %v1722_v47, %v1948_v1  ;;  %v963_v57 = vld [vmem:[#allocation2 + $0xd0] sm:$0xff] }
 0x140   :  { %v1119_v20 = vmax.f32 %v1055_v21, 0.0  ;;  %v723_v24 = vmul.f32 %v1722_v47, %v1950_v2  ;;  %v1085_v25 = vmax.f32 %v1021_v10, 0.0  ;;  %v826_v29 = vmax.f32 %v761_v15, 0.0 }
 0x141   :  { %v1117_v26 = vmax.f32 %v1053_v34, 0.0  ;;  %v858_v63 = vmax.f32 %v793_v16, 0.0  ;;  %v1156_v31 = vsel %vm1133_vm5, %v1087_v17, %v1023_v33  ;;  %v759_v19 = vadd.f32 %v1728_v50, %v691_v23 }
 0x142   :  { %v1188_v32 = vsel %vm1133_vm5, %v1119_v20, %v1055_v21  ;;  %v791_v40 = vadd.f32 %v1728_v50, %v723_v24  ;;  %1220 = vst [vmem:[#allocation5 + $0xb0] sm:$0xff] %v1156_v31  ;;  %v1154_v1 = vsel %vm1133_vm5, %v1085_v25, %v1021_v10  ;;  %v896_v27 = vsel %vm872_vm4, %v826_v29, %v761_v15  ;;  %v993_v20 = vld [vmem:[#allocation2 + $0x1c0] sm:$0xff] }
 0x143   :  { %1252 = vst [vmem:[#allocation5 + $0x1b0] sm:$0xff] %v1188_v32  ;;  %v1186_v2 = vsel %vm1133_vm5, %v1117_v26, %v1053_v34  ;;  %v928_v51 = vsel %vm872_vm4, %v858_v63, %v793_v16  ;;  %1218 = vst [vmem:[#allocation5 + $0xa0] sm:$0xff] %v1154_v1  ;;  %v1024_v13 = vadd.f32 %v960_v30, %v896_v27  ;;  %v824_v35 = vmax.f32 %v759_v19, 0.0  ;;  %v995_v34 = vld [vmem:[#allocation2 + $0x1d0] sm:$0xff]  ;;  %v961_v16 = vld [vmem:[#allocation2 + $0xc0] sm:$0xff] }
 0x144   :  { %1250 = vst [vmem:[#allocation5 + $0x1a0] sm:$0xff] %v1186_v2  ;;  %v1056_v14 = vadd.f32 %v992_v0, %v928_v51  ;;  %v856_v38 = vmax.f32 %v791_v40, 0.0  ;;  %v696_v39 = vmul.f32 %v1974_v11, %v1722_v47  ;;  %v728_v55 = vmul.f32 %v1976_v12, %v1722_v47 }
 0x145   :  { %v694_v43 = vmul.f32 %v1722_v47, %v1978_v41  ;;  %v726_v44 = vmul.f32 %v1722_v47, %v1980_v42  ;;  %v1088_v52 = vmax.f32 %v1024_v13, 0.0  ;;  %v894_v53 = vsel %vm872_vm4, %v824_v35, %v759_v19 }
 0x146   :  { %v1120_v28 = vmax.f32 %v1056_v14, 0.0  ;;  %v926_v54 = vsel %vm872_vm4, %v856_v38, %v791_v40  ;;  %v1022_v5 = vadd.f32 %v958_v36, %v894_v53  ;;  %v764_v11 = vadd.f32 %v1728_v50, %v696_v39  ;;  %v964_v36 = vld [vmem:[#allocation2 + $0xd8] sm:$0xff] }
 0x147   :  { %v1054_v6 = vadd.f32 %v990_v46, %v926_v54  ;;  %v796_v12 = vadd.f32 %v1728_v50, %v728_v55  ;;  %v1157_v41 = vsel %vm1133_vm5, %v1088_v52, %v1024_v13  ;;  %v762_v7 = vadd.f32 %v1728_v50, %v694_v43  ;;  %v996_v46 = vld [vmem:[#allocation2 + $0x1d8] sm:$0xff] }
 0x148   :  { %v1189_v42 = vsel %vm1133_vm5, %v1120_v28, %v1056_v14  ;;  %v794_v8 = vadd.f32 %v1728_v50, %v726_v44  ;;  %1221 = vst [vmem:[#allocation5 + $0xb8] sm:$0xff] %v1157_v41  ;;  %v1086_v33 = vmax.f32 %v1022_v5, 0.0  ;;  %v829_v61 = vmax.f32 %v764_v11, 0.0 }
 0x149   :  { %1253 = vst [vmem:[#allocation5 + $0x1b8] sm:$0xff] %v1189_v42  ;;  %v1118_v21 = vmax.f32 %v1054_v6, 0.0  ;;  %v861_v10 = vmax.f32 %v796_v12, 0.0  ;;  %v827_v15 = vmax.f32 %v762_v7, 0.0  ;;  %v697_v23 = vmul.f32 %v1986_v62, %v1722_v47 }
 0x14a   :  { %v859_v17 = vmax.f32 %v794_v8, 0.0  ;;  %v729_v24 = vmul.f32 %v1988_v58, %v1722_v47  ;;  %v1155_v25 = vsel %vm1133_vm5, %v1086_v33, %v1022_v5  ;;  %v899_v29 = vsel %vm872_vm4, %v829_v61, %v764_v11 }
 0x14b   :  { %v1187_v26 = vsel %vm1133_vm5, %v1118_v21, %v1054_v6  ;;  %v931_v30 = vsel %vm872_vm4, %v861_v10, %v796_v12  ;;  %1219 = vst [vmem:[#allocation5 + $0xa8] sm:$0xff] %v1155_v25  ;;  %v1027_v63 = vadd.f32 %v963_v57, %v899_v29  ;;  %v897_v62 = vsel %vm872_vm4, %v827_v15, %v762_v7  ;;  %v962_v6 = vld [vmem:[#allocation2 + $0xc8] sm:$0xff] }
 0x14c   :  { %1251 = vst [vmem:[#allocation5 + $0x1a8] sm:$0xff] %v1187_v26  ;;  %v1059_v0 = vadd.f32 %v995_v34, %v931_v30  ;;  %v929_v58 = vsel %vm872_vm4, %v859_v17, %v794_v8  ;;  %v1025_v31 = vadd.f32 %v961_v16, %v897_v62  ;;  %v765_v19 = vadd.f32 %v1728_v50, %v697_v23  ;;  %v994_v12 = vld [vmem:[#allocation2 + $0x1c8] sm:$0xff]  ;;  %v999_v26 = vld [vmem:[#allocation2 + $0x1f0] sm:$0xff]  ;;  %v965_v30 = vld [vmem:[#allocation2 + $0xe0] sm:$0xff] }
 0x14d   :  { %v1057_v32 = vadd.f32 %v993_v20, %v929_v58  ;;  %v797_v40 = vadd.f32 %v1728_v50, %v729_v24  ;;  %v1091_v1 = vmax.f32 %v1027_v63, 0.0  ;;  %v695_v27 = vmul.f32 %v1722_v47, %v1990_v3  ;;  %v967_v24 = vld [vmem:[#allocation2 + $0xf0] sm:$0xff] }
 0x14e   :  { %v1123_v2 = vmax.f32 %v1059_v0, 0.0  ;;  %v727_v51 = vmul.f32 %v1722_v47, %v1992_v4  ;;  %v1089_v13 = vmax.f32 %v1025_v31, 0.0  ;;  %v830_v35 = vmax.f32 %v765_v19, 0.0 }
 0x14f   :  { %v1121_v14 = vmax.f32 %v1057_v32, 0.0  ;;  %v862_v38 = vmax.f32 %v797_v40, 0.0  ;;  %v1160_v39 = vsel %vm1133_vm5, %v1091_v1, %v1027_v63  ;;  %v763_v43 = vadd.f32 %v1728_v50, %v695_v27 }
 0x150   :  { %v1192_v55 = vsel %vm1133_vm5, %v1123_v2, %v1059_v0  ;;  %v795_v44 = vadd.f32 %v1728_v50, %v727_v51  ;;  %1224 = vst [vmem:[#allocation5 + $0xd0] sm:$0xff] %v1160_v39  ;;  %v1158_v3 = vsel %vm1133_vm5, %v1089_v13, %v1025_v31  ;;  %v900_v52 = vsel %vm872_vm4, %v830_v35, %v765_v19  ;;  %v997_v0 = vld [vmem:[#allocation2 + $0x1e0] sm:$0xff] }
 0x151   :  { %1256 = vst [vmem:[#allocation5 + $0x1d0] sm:$0xff] %v1192_v55  ;;  %v1190_v4 = vsel %vm1133_vm5, %v1121_v14, %v1057_v32  ;;  %v932_v28 = vsel %vm872_vm4, %v862_v38, %v797_v40  ;;  %1222 = vst [vmem:[#allocation5 + $0xc0] sm:$0xff] %v1158_v3  ;;  %v1028_v53 = vadd.f32 %v964_v36, %v900_v52  ;;  %v828_v5 = vmax.f32 %v763_v43, 0.0 }
 0x152   :  { %1254 = vst [vmem:[#allocation5 + $0x1c0] sm:$0xff] %v1190_v4  ;;  %v1060_v54 = vadd.f32 %v996_v46, %v932_v28  ;;  %v860_v11 = vmax.f32 %v795_v44, 0.0  ;;  %v700_v41 = vmul.f32 %v2020_v37, %v1722_v47  ;;  %v732_v42 = vmul.f32 %v2022_v45, %v1722_v47  ;;  %v1000_v4 = vld [vmem:[#allocation2 + $0x1f8] sm:$0xff] }
 0x153   :  { %v698_v7 = vmul.f32 %v1722_v47, %v2026_v18  ;;  %v730_v8 = vmul.f32 %v1722_v47, %v2028_v56  ;;  %v1092_v33 = vmax.f32 %v1028_v53, 0.0  ;;  %v898_v61 = vsel %vm872_vm4, %v828_v5, %v763_v43 }
 0x154   :  { %v1124_v21 = vmax.f32 %v1060_v54, 0.0  ;;  %v930_v57 = vsel %vm872_vm4, %v860_v11, %v795_v44  ;;  %v1026_v10 = vadd.f32 %v962_v6, %v898_v61  ;;  %v768_v37 = vadd.f32 %v1728_v50, %v700_v41  ;;  %v968_v44 = vld [vmem:[#allocation2 + $0xf8] sm:$0xff] }
 0x155   :  { %v1058_v34 = vadd.f32 %v994_v12, %v930_v57  ;;  %v800_v45 = vadd.f32 %v1728_v50, %v732_v42  ;;  %v1161_v18 = vsel %vm1133_vm5, %v1092_v33, %v1028_v53  ;;  %v766_v15 = vadd.f32 %v1728_v50, %v698_v7  ;;  %v998_v42 = vld [vmem:[#allocation2 + $0x1e8] sm:$0xff] }
 0x156   :  { %v1193_v56 = vsel %vm1133_vm5, %v1124_v21, %v1060_v54  ;;  %v798_v16 = vadd.f32 %v1728_v50, %v730_v8  ;;  %1225 = vst [vmem:[#allocation5 + $0xd8] sm:$0xff] %v1161_v18  ;;  %v1090_v17 = vmax.f32 %v1026_v10, 0.0  ;;  %v833_v23 = vmax.f32 %v768_v37, 0.0 }
 0x157   :  { %1257 = vst [vmem:[#allocation5 + $0x1d8] sm:$0xff] %v1193_v56  ;;  %v1122_v20 = vmax.f32 %v1058_v34, 0.0  ;;  %v865_v25 = vmax.f32 %v800_v45, 0.0  ;;  %v831_v29 = vmax.f32 %v766_v15, 0.0  ;;  %v701_v62 = vmul.f32 %v2036_v59, %v1722_v47 }
 0x158   :  { %v863_v63 = vmax.f32 %v798_v16, 0.0  ;;  %v733_v58 = vmul.f32 %v2038_v60, %v1722_v47  ;;  %v1159_v31 = vsel %vm1133_vm5, %v1090_v17, %v1026_v10  ;;  %v903_v19 = vsel %vm872_vm4, %v833_v23, %v768_v37 }
 0x159   :  { %v1191_v32 = vsel %vm1133_vm5, %v1122_v20, %v1058_v34  ;;  %v935_v40 = vsel %vm872_vm4, %v865_v25, %v800_v45  ;;  %1223 = vst [vmem:[#allocation5 + $0xc8] sm:$0xff] %v1159_v31  ;;  %v1031_v1 = vadd.f32 %v967_v24, %v903_v19  ;;  %v901_v59 = vsel %vm872_vm4, %v831_v29, %v766_v15 }
 0x15a   :  { %1255 = vst [vmem:[#allocation5 + $0x1c8] sm:$0xff] %v1191_v32  ;;  %v1063_v2 = vadd.f32 %v999_v26, %v935_v40  ;;  %v933_v60 = vsel %vm872_vm4, %v863_v63, %v798_v16  ;;  %v1029_v27 = vadd.f32 %v965_v30, %v901_v59  ;;  %v769_v13 = vadd.f32 %v1728_v50, %v701_v62 }
 0x15b   :  { %v1061_v51 = vadd.f32 %v997_v0, %v933_v60  ;;  %v801_v14 = vadd.f32 %v1728_v50, %v733_v58  ;;  %v1095_v35 = vmax.f32 %v1031_v1, 0.0  ;;  %v699_v38 = vmul.f32 %v1722_v47, %v2040_v22 }
 0x15c   :  { %v1127_v36 = vmax.f32 %v1063_v2, 0.0  ;;  %v731_v46 = vmul.f32 %v1722_v47, %v2042_v9  ;;  %v1093_v39 = vmax.f32 %v1029_v27, 0.0  ;;  %v834_v43 = vmax.f32 %v769_v13, 0.0 }
 0x15d   :  { %v1125_v55 = vmax.f32 %v1061_v51, 0.0  ;;  %v866_v3 = vmax.f32 %v801_v14, 0.0  ;;  %v1164_v52 = vsel %vm1133_vm5, %v1095_v35, %v1031_v1  ;;  %v767_v53 = vadd.f32 %v1728_v50, %v699_v38 }
 0x15e   :  { %v1196_v28 = vsel %vm1133_vm5, %v1127_v36, %v1063_v2  ;;  %v799_v54 = vadd.f32 %v1728_v50, %v731_v46  ;;  %1228 = vst [vmem:[#allocation5 + $0xf0] sm:$0xff] %v1164_v52  ;;  %v1162_v47 = vsel %vm1133_vm5, %v1093_v39, %v1029_v27  ;;  %v904_v9 = vsel %vm872_vm4, %v834_v43, %v769_v13  ;;  %v966_v50 = vld [vmem:[#allocation2 + $0xe8] sm:$0xff] }
 0x15f   :  { %1260 = vst [vmem:[#allocation5 + $0x1f0] sm:$0xff] %v1196_v28  ;;  %v1194_v22 = vsel %vm1133_vm5, %v1125_v55, %v1061_v51  ;;  %v936_v5 = vsel %vm872_vm4, %v866_v3, %v801_v14  ;;  %1226 = vst [vmem:[#allocation5 + $0xe0] sm:$0xff] %v1162_v47  ;;  %v1032_v6 = vadd.f32 %v968_v44, %v904_v9  ;;  %v832_v12 = vmax.f32 %v767_v53, 0.0 }
 0x160   :  { %1258 = vst [vmem:[#allocation5 + $0x1e0] sm:$0xff] %v1194_v22  ;;  %v1064_v11 = vadd.f32 %v1000_v4, %v936_v5  ;;  %v864_v41 = vmax.f32 %v799_v54, 0.0 }
 0x161   :  { %v1096_v7 = vmax.f32 %v1032_v6, 0.0  ;;  %v902_v33 = vsel %vm872_vm4, %v832_v12, %v767_v53 }
 0x162   :  { %v1128_v8 = vmax.f32 %v1064_v11, 0.0  ;;  %v934_v21 = vsel %vm872_vm4, %v864_v41, %v799_v54  ;;  %v1030_v61 = vadd.f32 %v966_v50, %v902_v33 }
 0x163   :  { %v1062_v57 = vadd.f32 %v998_v42, %v934_v21  ;;  %v1165_v10 = vsel %vm1133_vm5, %v1096_v7, %v1032_v6 }
 0x164   :  { %v1197_v34 = vsel %vm1133_vm5, %v1128_v8, %v1064_v11  ;;  %1229 = vst [vmem:[#allocation5 + $0xf8] sm:$0xff] %v1165_v10  ;;  %v1094_v37 = vmax.f32 %v1030_v61, 0.0 }
 0x165   :  { %1261 = vst [vmem:[#allocation5 + $0x1f8] sm:$0xff] %v1197_v34  ;;  %v1126_v45 = vmax.f32 %v1062_v57, 0.0 }
 0x166   :  { %v1163_v18 = vsel %vm1133_vm5, %v1094_v37, %v1030_v61 }
 0x167   :  { %v1195_v48 = vsel %vm1133_vm5, %v1126_v45, %v1062_v57  ;;  %1227 = vst [vmem:[#allocation5 + $0xe8] sm:$0xff] %v1163_v18 }
 0x168   :  { %1259 = vst [vmem:[#allocation5 + $0x1e8] sm:$0xff] %v1195_v48 }
 0x169   :  { %1524 = shalt.err (!%p1521_p12)
}
 0x16a   :  { %s1525_s22 = scalar_lea.hbm %s2279_s4, 8192 }
 0x16b   :  { %p1526_p13 = scmp.ne.s32.totalorder %s2279_s4, %s1525_s22  ;;  %p1529_p0 = scmp.lt.u32.totalorder %s1525_s22, %s2279_s4 }
 0x16d   :  { %p1531_p1 = pnand %p1529_p0, %p1526_p13 }
 0x16f   :  { %1534 = shalt.err (!%p1531_p1)
}
 0x170   :  { %1273 = dma.vmem_to_hbm [thread:$0]  %s1268_s2, 8192, %s2279_s4, [#allocation4], %s1540_s25, %s1540_s25, %s1541_s26  }
 0x171   :  { %1537 = dma.done.wait [#allocation4], 8192  }
 0x172   :  { %1538 = vsyncadd [#allocation4], 4294959104 }
 0x173   :  { %1277 = vsyncpa [#allocation3], 1 }
 0x174   :  { %1278 = vsyncpa [#allocation4], 1 }

</bundles_post_ra>
